<compile_context>
chip_gen: v7x
topology: tpu7x:2x2x1
jax: 0.10.0
libtpu: 0.0.40
codegen_flags: <defaults>
</compile_context>

<pallas_src>
import functools

import jax
import jax.numpy as jnp
from jax.experimental import pallas as pl
from jax.experimental.pallas import tpu as pltpu

LN_EPS = 1e-5

# Storage/streaming dtype of the large weights and the MXU-input cast of the
# activations (f32 accumulation everywhere).  Set to jnp.float32 to recover
# exact PyTorch-reference numerics.
MXU_DTYPE = jnp.bfloat16


# --------------------------------------------------------------------------
# In-kernel helpers (also reused by the pure-JAX reference)
# --------------------------------------------------------------------------
def _layernorm(x, gamma, beta):
    mu = jnp.mean(x, axis=-1, keepdims=True)
    var = jnp.mean((x - mu) ** 2, axis=-1, keepdims=True)
    return (x - mu) * jax.lax.rsqrt(var + LN_EPS) * gamma + beta


def _gelu(x):
    # TODO(synk): PyTorch nn.GELU default is exact erf; tanh approximation used here.
    c = jnp.sqrt(2.0 / jnp.pi).astype(x.dtype)
    return 0.5 * x * (1.0 + jnp.tanh(c * (x + 0.044715 * (x ** 3))))


def _sigmoid(x):
    # Numerically-stable logistic: no inf/nan intermediates on either branch.
    xp = jnp.maximum(x, 0.0)
    xn = jnp.minimum(x, 0.0)
    en = jnp.exp(xn)
    return jnp.where(x >= 0, 1.0 / (1.0 + jnp.exp(-xp)), en / (1.0 + en))


# --------------------------------------------------------------------------
# Fused kernel: one grid step = (one batch block, one transformer layer)
# --------------------------------------------------------------------------
def bottleneck_kernel(x_ref, wf_ref, wqkv_ref, wout_ref, vecs_ref,
                      w1_ref, b1_ref, w2_ref, o_ref,
                      x_vmem, z_vmem, *, num_heads):
    layer = pl.program_id(1)
    n_layers = pl.num_programs(1)

    Bb, N, D = x_ref.shape
    H = num_heads
    dh = D // H

    # ---- first layer for this batch block: load x, compute the gate branch ----
    @pl.when(layer == 0)
    def _():
        for b in range(Bb):
            x_vmem[b * N:(b + 1) * N, :] = x_ref[b].astype(jnp.float32)
        x0 = x_vmem[...]                                       # (Bb*N, D)
        # z = x * sigmoid(x @ Wf^T): (D -> 1) projection as a VPU row-reduce.
        gate = _sigmoid(jnp.sum(x0 * wf_ref[0], axis=-1, keepdims=True))
        z_vmem[...] = x0 * gate

    x = x_vmem[...]                                            # (Bb*N, D) f32, VMEM resident

    # Packed per-layer vectors (one DMA): rows = aln_g, aln_b, bout, fln_g, fln_b, b2
    aln_g = vecs_ref[0, 0]
    aln_b = vecs_ref[0, 1]
    bout = vecs_ref[0, 2]
    fln_g = vecs_ref[0, 3]
    fln_b = vecs_ref[0, 4]
    b2 = vecs_ref[0, 5]

    # ------------------------- Attention + residual -------------------------
    xn = _layernorm(x, aln_g, aln_b)
    # Batch-folded QKV projection: M = Bb*N, attention scale pre-folded into wq.
    qkv = jnp.dot(xn.astype(MXU_DTYPE), wqkv_ref[0],
                  preferred_element_type=jnp.float32)          # (M, 3D) f32

    # (batch, head)-batched views, g = b*H + h.
    # TODO(synk): replace slice+stack with a head-major relayout (pltpu.einshape)
    #             and a flash/online-softmax KV loop for production N/D.
    def split(part):
        return jnp.stack(
            [qkv[b * N:(b + 1) * N, part * D + h * dh: part * D + (h + 1) * dh]
             for b in range(Bb) for h in range(H)], axis=0)    # (G, N, dh)

    q_g, k_g, v_g = split(0), split(1), split(2)

    s = jnp.einsum('gqe,gke->gqk', q_g.astype(MXU_DTYPE), k_g.astype(MXU_DTYPE),
                   preferred_element_type=jnp.float32)         # (G, N, N)
    s = s - jnp.max(s, axis=-1, keepdims=True)
    p = jnp.exp(s)
    p = p * pl.reciprocal(jnp.sum(p, axis=-1, keepdims=True), approx=True)
    o_g = jnp.einsum('gqk,gke->gqe', p.astype(MXU_DTYPE), v_g.astype(MXU_DTYPE),
                     preferred_element_type=jnp.float32)       # (G, N, dh)

    # Head merge + output projection with NO concat over heads: head-major
    # (H, dh, D) weight, per-head matmul batched over H, summed over heads.
    wout = wout_ref[0]                                         # (H, dh, D) bf16
    rows = []
    for b in range(Bb):
        o_b = o_g[b * H:(b + 1) * H]                           # (H, N, dh)
        rows.append(jnp.sum(
            jnp.einsum('hne,hed->hnd', o_b.astype(MXU_DTYPE), wout,
                       preferred_element_type=jnp.float32), axis=0))   # (N, D)
    x = x + jnp.concatenate(rows, axis=0) + bout

    # ---------------------------- FFN + residual ----------------------------
    xn = _layernorm(x, fln_g, fln_b)
    h1 = _gelu(jnp.dot(xn.astype(MXU_DTYPE), w1_ref[0],
                       preferred_element_type=jnp.float32) + b1_ref[0, 0])  # (M, inner)
    x = x + jnp.dot(h1.astype(MXU_DTYPE), w2_ref[0],
                    preferred_element_type=jnp.float32) + b2

    x_vmem[...] = x

    # ---- last layer: add gate branch, single HBM writeback per batch block ----
    @pl.when(layer == n_layers - 1)
    def _():
        y = x + z_vmem[...]
        for b in range(Bb):
            o_ref[b] = y[b * N:(b + 1) * N, :].astype(o_ref.dtype)


# --------------------------------------------------------------------------
# Wrapper: single pallas_call over grid (batch_blocks, depth)
# --------------------------------------------------------------------------
def bottleneck_forward(x, params, *, num_heads=8, batch_block=None):
    B, N, D = x.shape
    assert D % num_heads == 0, "dim must be evenly divisible by num_heads"
    L = params["wqkv"].shape[0]
    inner = params["w1"].shape[-1]
    dh = D // num_heads
    scale = float(dh ** -0.5)

    if batch_block is None:
        # Fold the whole batch: weights are streamed once per layer total.
        # NOTE(v7x megacore): when B >= 2 and VMEM allows, pick batch_block so
        # there are >= 2 batch blocks and both TensorCores get work.
        batch_block = B
    assert B % batch_block == 0, "batch must be divisible by batch_block"
    Bb = batch_block

    # ---- wrapper-side layout plumbing (pure reshape/cast, no compute) ----
    wqkv = params["wqkv"].at[:, :, :D].multiply(scale).astype(MXU_DTYPE)   # (L, D, 3D)
    wout = params["wout"].reshape(L, num_heads, dh, D).astype(MXU_DTYPE)   # (L, H, dh, D)
    w1 = params["w1"].astype(MXU_DTYPE)                                    # (L, D, inner)
    w2 = params["w2"].astype(MXU_DTYPE)                                    # (L, inner, D)
    # Pack the small per-layer vectors into one block -> fewer DMAs per step.
    vecs = jnp.stack([params["aln_g"], params["aln_b"], params["bout"],
                      params["fln_g"], params["fln_b"], params["b2"]], axis=1)  # (L, 6, D)
    b1 = params["b1"][:, None, :]                                          # (L, 1, inner)
    wf = params["wf"]                                                      # (1, D)

    xmap = lambda bb, l: (bb, 0, 0)            # activation / output: per batch block
    wmap3 = lambda bb, l: (l, 0, 0)            # per-layer weights: streamed over depth
    wmap4 = lambda bb, l: (l, 0, 0, 0)

    kernel = functools.partial(bottleneck_kernel, num_heads=num_heads)
    return pl.pallas_call(
        kernel,
        out_shape=jax.ShapeDtypeStruct((B, N, D), x.dtype),
        grid=(B // Bb, L),
        in_specs=[
            pl.BlockSpec((Bb, N, D), xmap),                       # x
            pl.BlockSpec((1, D), lambda bb, l: (0, 0)),           # wf (hidden_f weight)
            pl.BlockSpec((1, D, 3 * D), wmap3),                   # to_qkv (scale folded, bf16)
            pl.BlockSpec((1, num_heads, dh, D), wmap4),           # to_out weight, head-major
            pl.BlockSpec((1, 6, D), wmap3),                       # packed LN/bias vectors
            pl.BlockSpec((1, D, inner), wmap3),                   # ffn w1
            pl.BlockSpec((1, 1, inner), wmap3),                   # ffn b1
            pl.BlockSpec((1, inner, D), wmap3),                   # ffn w2
        ],
        out_specs=pl.BlockSpec((Bb, N, D), xmap),
        scratch_shapes=[
            pltpu.VMEM((Bb * N, D), jnp.float32),   # resident activation x
            pltpu.VMEM((Bb * N, D), jnp.float32),   # gate branch z
        ],
        compiler_params=pltpu.CompilerParams(
            dimension_semantics=("parallel", "arbitrary"),
            # 48 MiB: fits v5e/v6e easily and leaves headroom on v7x (64 MiB physical).
            vmem_limit_bytes=48 * 1024 * 1024,
        ),
    )(x, wf, wqkv, wout, vecs, w1, b1, w2)


# --------------------------------------------------------------------------
# Parameter init (per-layer params stacked along a leading depth axis)
# --------------------------------------------------------------------------
def init_params(key, dim, depth, ff_mult=4):
    inner = dim * ff_mult
    keys = iter(jax.random.split(key, 11 * depth + 1))

    def nrm(shape, s=0.02):
        return s * jax.random.normal(next(keys), shape, jnp.float32)

    return dict(
        wqkv=jnp.stack([nrm((dim, 3 * dim)) for _ in range(depth)]),
        wout=jnp.stack([nrm((dim, dim)) for _ in range(depth)]),
        bout=jnp.stack([nrm((dim,)) for _ in range(depth)]),
        w1=jnp.stack([nrm((dim, inner)) for _ in range(depth)]),
        b1=jnp.stack([nrm((inner,)) for _ in range(depth)]),
        w2=jnp.stack([nrm((inner, dim)) for _ in range(depth)]),
        b2=jnp.stack([nrm((dim,)) for _ in range(depth)]),
        aln_g=jnp.stack([1.0 + nrm((dim,), 0.1) for _ in range(depth)]),
        aln_b=jnp.stack([nrm((dim,), 0.1) for _ in range(depth)]),
        fln_g=jnp.stack([1.0 + nrm((dim,), 0.1) for _ in range(depth)]),
        fln_b=jnp.stack([nrm((dim,), 0.1) for _ in range(depth)]),
        wf=nrm((1, dim), 0.5),
    )


# --------------------------------------------------------------------------
# Pure-JAX f32 reference (mirrors the PyTorch forward) for validation
# --------------------------------------------------------------------------
def bottleneck_reference(x, params, *, num_heads=8):
    B, N, D = x.shape
    L = params["wqkv"].shape[0]
    H = num_heads
    dh = D // H
    scale = dh ** -0.5

    z = x * _sigmoid(jnp.sum(x * params["wf"][0], axis=-1, keepdims=True))
    for i in range(L):
        xn = _layernorm(x, params["aln_g"][i], params["aln_b"][i])
        qkv = xn @ params["wqkv"][i]
        q, k, v = jnp.split(qkv, 3, axis=-1)
        q = q.reshape(B, N, H, dh).transpose(0, 2, 1, 3)
        k = k.reshape(B, N, H, dh).transpose(0, 2, 1, 3)
        v = v.reshape(B, N, H, dh).transpose(0, 2, 1, 3)
        s = jnp.einsum('bhqd,bhkd->bhqk', q, k) * scale
        p = jax.nn.softmax(s, axis=-1)
        o = jnp.einsum('bhqk,bhkd->bhqd', p, v)
        o = o.transpose(0, 2, 1, 3).reshape(B, N, D)
        x = x + o @ params["wout"][i] + params["bout"][i]
        xn = _layernorm(x, params["fln_g"][i], params["fln_b"][i])
        x = x + _gelu(xn @ params["w1"][i] + params["b1"][i]) @ params["w2"][i] \
              + params["b2"][i]
    return x + z


# --------------------------------------------------------------------------
if __name__ == "__main__":
    B, N, DIM = 2, 8, 32
    DEPTH, NUM_HEADS, FF_MULT = 3, 8, 4

    key = jax.random.PRNGKey(0)
    key, xkey, pkey = jax.random.split(key, 3)
    x = jax.random.normal(xkey, (B, N, DIM), jnp.float32)
    params = init_params(pkey, DIM, DEPTH, ff_mult=FF_MULT)

    out = bottleneck_forward(x, params, num_heads=NUM_HEADS)
    out = jax.block_until_ready(out)

    assert out.shape == (B, N, DIM), out.shape
    assert bool(jnp.all(jnp.isfinite(out)))

    ref = bottleneck_reference(x, params, num_heads=NUM_HEADS)
    err = float(jnp.max(jnp.abs(out - ref)))
    # Tolerance widened vs a pure-f32 kernel: large weights stream as bf16.
    assert err < 3e-2, f"max abs err vs reference: {err}"

    print("KERNEL_OK")
</pallas_src>

<mosaic_0001>
module attributes {stable_mosaic.version = 11 : i64} {
  func.func @bottleneck_kernel(%arg0: i32, %arg1: i32, %arg2: memref<2x8x32xf32, #tpu.memory_space<vmem>>, %arg3: memref<1x32xf32, #tpu.memory_space<vmem>>, %arg4: memref<1x32x96xbf16, #tpu.memory_space<vmem>>, %arg5: memref<1x8x4x32xbf16, #tpu.memory_space<vmem>>, %arg6: memref<1x6x32xf32, #tpu.memory_space<vmem>>, %arg7: memref<1x32x128xbf16, #tpu.memory_space<vmem>>, %arg8: memref<1x1x128xf32, #tpu.memory_space<vmem>>, %arg9: memref<1x128x32xbf16, #tpu.memory_space<vmem>>, %arg10: memref<2x8x32xf32, #tpu.memory_space<vmem>>, %arg11: memref<16x32xf32, #tpu.memory_space<vmem>>, %arg12: memref<16x32xf32, #tpu.memory_space<vmem>>) attributes {dimension_semantics = [#tpu.dimension_semantics<parallel>, #tpu.dimension_semantics<arbitrary>], iteration_bounds = array<i64: 1, 3>, scalar_prefetch = 0 : i64, scratch_operands = 2 : i64, tpu.core_type = #tpu.core_type<tc>, window_params = [{transform_indices = @transform_0, window_bounds = array<i64: 2, 8, 32>}, {pipeline_mode = #tpu.pipeline_mode<synchronous>, transform_indices = @transform_1, window_bounds = array<i64: 1, 32>}, {transform_indices = @transform_2, window_bounds = array<i64: 1, 32, 96>}, {transform_indices = @transform_3, window_bounds = array<i64: 1, 8, 4, 32>}, {transform_indices = @transform_4, window_bounds = array<i64: 1, 6, 32>}, {transform_indices = @transform_5, window_bounds = array<i64: 1, 32, 128>}, {transform_indices = @transform_6, window_bounds = array<i64: 1, 1, 128>}, {transform_indices = @transform_7, window_bounds = array<i64: 1, 128, 32>}, {transform_indices = @transform_8, window_bounds = array<i64: 2, 8, 32>}]} {
    %c0_i32 = arith.constant 0 : i32
    %0 = arith.cmpi eq, %arg1, %c0_i32 : i32
    %1 = arith.extui %0 : i1 to i32
    %c0_i32_0 = arith.constant 0 : i32
    %2 = arith.cmpi ne, %1, %c0_i32_0 : i32
    scf.if %2 {
      %c0_58 = arith.constant 0 : index
      %c0_59 = arith.constant 0 : index
      %c0_60 = arith.constant 0 : index
      %233 = vector.load %arg2[%c0_58, %c0_59, %c0_60] : memref<2x8x32xf32, #tpu.memory_space<vmem>>, vector<1x8x32xf32>
      %234 = vector.shape_cast %233 : vector<1x8x32xf32> to vector<8x32xf32>
      %c0_61 = arith.constant 0 : index
      %c0_62 = arith.constant 0 : index
      %235 = vector.load %arg11[%c0_61, %c0_62] : memref<16x32xf32, #tpu.memory_space<vmem>>, vector<8x32xf32>
      tpu.vector_store %arg11[%c0_61, %c0_62], %234 {strides = array<i32>} : memref<16x32xf32, #tpu.memory_space<vmem>>, vector<8x32xf32>,
      %c1_63 = arith.constant 1 : index
      %c0_64 = arith.constant 0 : index
      %c0_65 = arith.constant 0 : index
      %236 = vector.load %arg2[%c1_63, %c0_64, %c0_65] : memref<2x8x32xf32, #tpu.memory_space<vmem>>, vector<1x8x32xf32>
      %237 = vector.shape_cast %236 : vector<1x8x32xf32> to vector<8x32xf32>
      %c8 = arith.constant 8 : index
      %c0_66 = arith.constant 0 : index
      %238 = vector.load %arg11[%c8, %c0_66] : memref<16x32xf32, #tpu.memory_space<vmem>>, vector<8x32xf32>
      tpu.vector_store %arg11[%c8, %c0_66], %237 {strides = array<i32>} : memref<16x32xf32, #tpu.memory_space<vmem>>, vector<8x32xf32>,
      %c0_67 = arith.constant 0 : index
      %c0_68 = arith.constant 0 : index
      %239 = vector.load %arg11[%c0_67, %c0_68] : memref<16x32xf32, #tpu.memory_space<vmem>>, vector<16x32xf32>
      %c0_69 = arith.constant 0 : index
      %c0_70 = arith.constant 0 : index
      %240 = vector.load %arg3[%c0_69, %c0_70] : memref<1x32xf32, #tpu.memory_space<vmem>>, vector<1x32xf32>
      %241 = vector.shape_cast %240 : vector<1x32xf32> to vector<32xf32>
      %242 = vector.shape_cast %241 : vector<32xf32> to vector<1x32xf32>
      %243 = vector.broadcast %242 : vector<1x32xf32> to vector<16x32xf32>
      %244 = arith.mulf %239, %243 : vector<16x32xf32>
      %cst_71 = arith.constant dense<0.000000e+00> : vector<16xf32>
      %245 = vector.multi_reduction <add>, %244, %cst_71 [1] : vector<16x32xf32> to vector<16xf32>
      %246 = vector.shape_cast %245 : vector<16xf32> to vector<16x1xf32>
      %cst_72 = arith.constant 0.000000e+00 : f32
      %247 = vector.broadcast %cst_72 : f32 to vector<16x1xf32>
      %248 = arith.maximumf %246, %247 : vector<16x1xf32>
      %cst_73 = arith.constant 0.000000e+00 : f32
      %249 = vector.broadcast %cst_73 : f32 to vector<16x1xf32>
      %250 = arith.minimumf %246, %249 : vector<16x1xf32>
      %251 = math.exp %250 : vector<16x1xf32>
      %cst_74 = arith.constant 0.000000e+00 : f32
      %252 = vector.broadcast %cst_74 : f32 to vector<16x1xf32>
      %253 = arith.cmpf oge, %246, %252 : vector<16x1xf32>
      %cst_75 = arith.constant 0.000000e+00 : f32
      %254 = vector.broadcast %cst_75 : f32 to vector<16x1xf32>
      %255 = arith.subf %254, %248 : vector<16x1xf32>
      %256 = math.exp %255 : vector<16x1xf32>
      %cst_76 = arith.constant 1.000000e+00 : f32
      %257 = vector.broadcast %cst_76 : f32 to vector<16x1xf32>
      %258 = arith.addf %257, %256 : vector<16x1xf32>
      %cst_77 = arith.constant 1.000000e+00 : f32
      %259 = vector.broadcast %cst_77 : f32 to vector<16x1xf32>
      %260 = arith.divf %259, %258 : vector<16x1xf32>
      %cst_78 = arith.constant 1.000000e+00 : f32
      %261 = vector.broadcast %cst_78 : f32 to vector<16x1xf32>
      %262 = arith.addf %261, %251 : vector<16x1xf32>
      %263 = arith.divf %251, %262 : vector<16x1xf32>
      %264 = arith.select %253, %260, %263 : vector<16x1xi1>, vector<16x1xf32>
      %265 = vector.broadcast %264 : vector<16x1xf32> to vector<16x32xf32>
      %266 = arith.mulf %239, %265 : vector<16x32xf32>
      %c0_79 = arith.constant 0 : index
      %c0_80 = arith.constant 0 : index
      %267 = vector.load %arg12[%c0_79, %c0_80] : memref<16x32xf32, #tpu.memory_space<vmem>>, vector<16x32xf32>
      tpu.vector_store %arg12[%c0_79, %c0_80], %266 {strides = array<i32>} : memref<16x32xf32, #tpu.memory_space<vmem>>, vector<16x32xf32>,
    } else {
    }
    %c0 = arith.constant 0 : index
    %c0_1 = arith.constant 0 : index
    %3 = vector.load %arg11[%c0, %c0_1] : memref<16x32xf32, #tpu.memory_space<vmem>>, vector<16x32xf32>
    %c0_2 = arith.constant 0 : index
    %c0_3 = arith.constant 0 : index
    %c0_4 = arith.constant 0 : index
    %4 = vector.load %arg6[%c0_2, %c0_3, %c0_4] : memref<1x6x32xf32, #tpu.memory_space<vmem>>, vector<1x1x32xf32>
    %5 = vector.shape_cast %4 : vector<1x1x32xf32> to vector<32xf32>
    %c0_5 = arith.constant 0 : index
    %c1 = arith.constant 1 : index
    %c0_6 = arith.constant 0 : index
    %6 = vector.load %arg6[%c0_5, %c1, %c0_6] : memref<1x6x32xf32, #tpu.memory_space<vmem>>, vector<1x1x32xf32>
    %7 = vector.shape_cast %6 : vector<1x1x32xf32> to vector<32xf32>
    %c0_7 = arith.constant 0 : index
    %c2 = arith.constant 2 : index
    %c0_8 = arith.constant 0 : index
    %8 = vector.load %arg6[%c0_7, %c2, %c0_8] : memref<1x6x32xf32, #tpu.memory_space<vmem>>, vector<1x1x32xf32>
    %9 = vector.shape_cast %8 : vector<1x1x32xf32> to vector<32xf32>
    %c0_9 = arith.constant 0 : index
    %c3 = arith.constant 3 : index
    %c0_10 = arith.constant 0 : index
    %10 = vector.load %arg6[%c0_9, %c3, %c0_10] : memref<1x6x32xf32, #tpu.memory_space<vmem>>, vector<1x1x32xf32>
    %11 = vector.shape_cast %10 : vector<1x1x32xf32> to vector<32xf32>
    %c0_11 = arith.constant 0 : index
    %c4 = arith.constant 4 : index
    %c0_12 = arith.constant 0 : index
    %12 = vector.load %arg6[%c0_11, %c4, %c0_12] : memref<1x6x32xf32, #tpu.memory_space<vmem>>, vector<1x1x32xf32>
    %13 = vector.shape_cast %12 : vector<1x1x32xf32> to vector<32xf32>
    %c0_13 = arith.constant 0 : index
    %c5 = arith.constant 5 : index
    %c0_14 = arith.constant 0 : index
    %14 = vector.load %arg6[%c0_13, %c5, %c0_14] : memref<1x6x32xf32, #tpu.memory_space<vmem>>, vector<1x1x32xf32>
    %15 = vector.shape_cast %14 : vector<1x1x32xf32> to vector<32xf32>
    %cst = arith.constant dense<0.000000e+00> : vector<16xf32>
    %16 = vector.multi_reduction <add>, %3, %cst [1] : vector<16x32xf32> to vector<16xf32>
    %17 = vector.shape_cast %16 : vector<16xf32> to vector<16x1xf32>
    %cst_15 = arith.constant 3.200000e+01 : f32
    %18 = vector.broadcast %cst_15 : f32 to vector<16x1xf32>
    %19 = arith.divf %17, %18 : vector<16x1xf32>
    %20 = vector.broadcast %19 : vector<16x1xf32> to vector<16x32xf32>
    %21 = arith.subf %3, %20 : vector<16x32xf32>
    %22 = arith.mulf %21, %21 : vector<16x32xf32>
    %cst_16 = arith.constant dense<0.000000e+00> : vector<16xf32>
    %23 = vector.multi_reduction <add>, %22, %cst_16 [1] : vector<16x32xf32> to vector<16xf32>
    %24 = vector.shape_cast %23 : vector<16xf32> to vector<16x1xf32>
    %cst_17 = arith.constant 3.200000e+01 : f32
    %25 = vector.broadcast %cst_17 : f32 to vector<16x1xf32>
    %26 = arith.divf %24, %25 : vector<16x1xf32>
    %27 = vector.broadcast %19 : vector<16x1xf32> to vector<16x32xf32>
    %28 = arith.subf %3, %27 : vector<16x32xf32>
    %cst_18 = arith.constant 9.99999974E-6 : f32
    %29 = vector.broadcast %cst_18 : f32 to vector<16x1xf32>
    %30 = arith.addf %26, %29 : vector<16x1xf32>
    %31 = math.rsqrt %30 : vector<16x1xf32>
    %32 = vector.broadcast %31 : vector<16x1xf32> to vector<16x32xf32>
    %33 = arith.mulf %28, %32 : vector<16x32xf32>
    %34 = vector.shape_cast %5 : vector<32xf32> to vector<1x32xf32>
    %35 = vector.broadcast %34 : vector<1x32xf32> to vector<16x32xf32>
    %36 = arith.mulf %33, %35 : vector<16x32xf32>
    %37 = vector.shape_cast %7 : vector<32xf32> to vector<1x32xf32>
    %38 = vector.broadcast %37 : vector<1x32xf32> to vector<16x32xf32>
    %39 = arith.addf %36, %38 : vector<16x32xf32>
    %40 = arith.truncf %39 : vector<16x32xf32> to vector<16x32xbf16>
    %c0_19 = arith.constant 0 : index
    %c0_20 = arith.constant 0 : index
    %c0_21 = arith.constant 0 : index
    %41 = vector.load %arg4[%c0_19, %c0_20, %c0_21] : memref<1x32x96xbf16, #tpu.memory_space<vmem>>, vector<1x32x96xbf16>
    %42 = vector.shape_cast %41 : vector<1x32x96xbf16> to vector<32x96xbf16>
    %cst_22 = arith.constant dense<0.000000e+00> : vector<16x96xf32>
    %43 = tpu.matmul %40, %42, %cst_22 {dimension_numbers = #tpu.dot_dimension_numbers<[1], [0], [0], [1], [0, 0, 1, 1], [], []>} : vector<16x32xbf16>, vector<32x96xbf16>, vector<16x96xf32> -> vector<16x96xf32>
    %44 = vector.extract_strided_slice %43 {offsets = [0, 0], sizes = [8, 4], strides = [1, 1]} : vector<16x96xf32> to vector<8x4xf32>
    %45 = vector.extract_strided_slice %43 {offsets = [0, 4], sizes = [8, 4], strides = [1, 1]} : vector<16x96xf32> to vector<8x4xf32>
    %46 = vector.extract_strided_slice %43 {offsets = [0, 8], sizes = [8, 4], strides = [1, 1]} : vector<16x96xf32> to vector<8x4xf32>
    %47 = vector.extract_strided_slice %43 {offsets = [0, 12], sizes = [8, 4], strides = [1, 1]} : vector<16x96xf32> to vector<8x4xf32>
    %48 = vector.extract_strided_slice %43 {offsets = [0, 16], sizes = [8, 4], strides = [1, 1]} : vector<16x96xf32> to vector<8x4xf32>
    %49 = vector.extract_strided_slice %43 {offsets = [0, 20], sizes = [8, 4], strides = [1, 1]} : vector<16x96xf32> to vector<8x4xf32>
    %50 = vector.extract_strided_slice %43 {offsets = [0, 24], sizes = [8, 4], strides = [1, 1]} : vector<16x96xf32> to vector<8x4xf32>
    %51 = vector.extract_strided_slice %43 {offsets = [0, 28], sizes = [8, 4], strides = [1, 1]} : vector<16x96xf32> to vector<8x4xf32>
    %52 = vector.extract_strided_slice %43 {offsets = [8, 0], sizes = [8, 4], strides = [1, 1]} : vector<16x96xf32> to vector<8x4xf32>
    %53 = vector.extract_strided_slice %43 {offsets = [8, 4], sizes = [8, 4], strides = [1, 1]} : vector<16x96xf32> to vector<8x4xf32>
    %54 = vector.extract_strided_slice %43 {offsets = [8, 8], sizes = [8, 4], strides = [1, 1]} : vector<16x96xf32> to vector<8x4xf32>
    %55 = vector.extract_strided_slice %43 {offsets = [8, 12], sizes = [8, 4], strides = [1, 1]} : vector<16x96xf32> to vector<8x4xf32>
    %56 = vector.extract_strided_slice %43 {offsets = [8, 16], sizes = [8, 4], strides = [1, 1]} : vector<16x96xf32> to vector<8x4xf32>
    %57 = vector.extract_strided_slice %43 {offsets = [8, 20], sizes = [8, 4], strides = [1, 1]} : vector<16x96xf32> to vector<8x4xf32>
    %58 = vector.extract_strided_slice %43 {offsets = [8, 24], sizes = [8, 4], strides = [1, 1]} : vector<16x96xf32> to vector<8x4xf32>
    %59 = vector.extract_strided_slice %43 {offsets = [8, 28], sizes = [8, 4], strides = [1, 1]} : vector<16x96xf32> to vector<8x4xf32>
    %60 = vector.shape_cast %44 : vector<8x4xf32> to vector<1x8x4xf32>
    %61 = vector.shape_cast %45 : vector<8x4xf32> to vector<1x8x4xf32>
    %62 = vector.shape_cast %46 : vector<8x4xf32> to vector<1x8x4xf32>
    %63 = vector.shape_cast %47 : vector<8x4xf32> to vector<1x8x4xf32>
    %64 = vector.shape_cast %48 : vector<8x4xf32> to vector<1x8x4xf32>
    %65 = vector.shape_cast %49 : vector<8x4xf32> to vector<1x8x4xf32>
    %66 = vector.shape_cast %50 : vector<8x4xf32> to vector<1x8x4xf32>
    %67 = vector.shape_cast %51 : vector<8x4xf32> to vector<1x8x4xf32>
    %68 = vector.shape_cast %52 : vector<8x4xf32> to vector<1x8x4xf32>
    %69 = vector.shape_cast %53 : vector<8x4xf32> to vector<1x8x4xf32>
    %70 = vector.shape_cast %54 : vector<8x4xf32> to vector<1x8x4xf32>
    %71 = vector.shape_cast %55 : vector<8x4xf32> to vector<1x8x4xf32>
    %72 = vector.shape_cast %56 : vector<8x4xf32> to vector<1x8x4xf32>
    %73 = vector.shape_cast %57 : vector<8x4xf32> to vector<1x8x4xf32>
    %74 = vector.shape_cast %58 : vector<8x4xf32> to vector<1x8x4xf32>
    %75 = vector.shape_cast %59 : vector<8x4xf32> to vector<1x8x4xf32>
    %76 = tpu.concatenate %60, %61, %62, %63, %64, %65, %66, %67, %68, %69, %70, %71, %72, %73, %74, %75 in 0 : vector<1x8x4xf32>, vector<1x8x4xf32>, vector<1x8x4xf32>, vector<1x8x4xf32>, vector<1x8x4xf32>, vector<1x8x4xf32>, vector<1x8x4xf32>, vector<1x8x4xf32>, vector<1x8x4xf32>, vector<1x8x4xf32>, vector<1x8x4xf32>, vector<1x8x4xf32>, vector<1x8x4xf32>, vector<1x8x4xf32>, vector<1x8x4xf32>, vector<1x8x4xf32> -> vector<16x8x4xf32>
    %77 = vector.extract_strided_slice %43 {offsets = [0, 32], sizes = [8, 4], strides = [1, 1]} : vector<16x96xf32> to vector<8x4xf32>
    %78 = vector.extract_strided_slice %43 {offsets = [0, 36], sizes = [8, 4], strides = [1, 1]} : vector<16x96xf32> to vector<8x4xf32>
    %79 = vector.extract_strided_slice %43 {offsets = [0, 40], sizes = [8, 4], strides = [1, 1]} : vector<16x96xf32> to vector<8x4xf32>
    %80 = vector.extract_strided_slice %43 {offsets = [0, 44], sizes = [8, 4], strides = [1, 1]} : vector<16x96xf32> to vector<8x4xf32>
    %81 = vector.extract_strided_slice %43 {offsets = [0, 48], sizes = [8, 4], strides = [1, 1]} : vector<16x96xf32> to vector<8x4xf32>
    %82 = vector.extract_strided_slice %43 {offsets = [0, 52], sizes = [8, 4], strides = [1, 1]} : vector<16x96xf32> to vector<8x4xf32>
    %83 = vector.extract_strided_slice %43 {offsets = [0, 56], sizes = [8, 4], strides = [1, 1]} : vector<16x96xf32> to vector<8x4xf32>
    %84 = vector.extract_strided_slice %43 {offsets = [0, 60], sizes = [8, 4], strides = [1, 1]} : vector<16x96xf32> to vector<8x4xf32>
    %85 = vector.extract_strided_slice %43 {offsets = [8, 32], sizes = [8, 4], strides = [1, 1]} : vector<16x96xf32> to vector<8x4xf32>
    %86 = vector.extract_strided_slice %43 {offsets = [8, 36], sizes = [8, 4], strides = [1, 1]} : vector<16x96xf32> to vector<8x4xf32>
    %87 = vector.extract_strided_slice %43 {offsets = [8, 40], sizes = [8, 4], strides = [1, 1]} : vector<16x96xf32> to vector<8x4xf32>
    %88 = vector.extract_strided_slice %43 {offsets = [8, 44], sizes = [8, 4], strides = [1, 1]} : vector<16x96xf32> to vector<8x4xf32>
    %89 = vector.extract_strided_slice %43 {offsets = [8, 48], sizes = [8, 4], strides = [1, 1]} : vector<16x96xf32> to vector<8x4xf32>
    %90 = vector.extract_strided_slice %43 {offsets = [8, 52], sizes = [8, 4], strides = [1, 1]} : vector<16x96xf32> to vector<8x4xf32>
    %91 = vector.extract_strided_slice %43 {offsets = [8, 56], sizes = [8, 4], strides = [1, 1]} : vector<16x96xf32> to vector<8x4xf32>
    %92 = vector.extract_strided_slice %43 {offsets = [8, 60], sizes = [8, 4], strides = [1, 1]} : vector<16x96xf32> to vector<8x4xf32>
    %93 = vector.shape_cast %77 : vector<8x4xf32> to vector<1x8x4xf32>
    %94 = vector.shape_cast %78 : vector<8x4xf32> to vector<1x8x4xf32>
    %95 = vector.shape_cast %79 : vector<8x4xf32> to vector<1x8x4xf32>
    %96 = vector.shape_cast %80 : vector<8x4xf32> to vector<1x8x4xf32>
    %97 = vector.shape_cast %81 : vector<8x4xf32> to vector<1x8x4xf32>
    %98 = vector.shape_cast %82 : vector<8x4xf32> to vector<1x8x4xf32>
    %99 = vector.shape_cast %83 : vector<8x4xf32> to vector<1x8x4xf32>
    %100 = vector.shape_cast %84 : vector<8x4xf32> to vector<1x8x4xf32>
    %101 = vector.shape_cast %85 : vector<8x4xf32> to vector<1x8x4xf32>
    %102 = vector.shape_cast %86 : vector<8x4xf32> to vector<1x8x4xf32>
    %103 = vector.shape_cast %87 : vector<8x4xf32> to vector<1x8x4xf32>
    %104 = vector.shape_cast %88 : vector<8x4xf32> to vector<1x8x4xf32>
    %105 = vector.shape_cast %89 : vector<8x4xf32> to vector<1x8x4xf32>
    %106 = vector.shape_cast %90 : vector<8x4xf32> to vector<1x8x4xf32>
    %107 = vector.shape_cast %91 : vector<8x4xf32> to vector<1x8x4xf32>
    %108 = vector.shape_cast %92 : vector<8x4xf32> to vector<1x8x4xf32>
    %109 = tpu.concatenate %93, %94, %95, %96, %97, %98, %99, %100, %101, %102, %103, %104, %105, %106, %107, %108 in 0 : vector<1x8x4xf32>, vector<1x8x4xf32>, vector<1x8x4xf32>, vector<1x8x4xf32>, vector<1x8x4xf32>, vector<1x8x4xf32>, vector<1x8x4xf32>, vector<1x8x4xf32>, vector<1x8x4xf32>, vector<1x8x4xf32>, vector<1x8x4xf32>, vector<1x8x4xf32>, vector<1x8x4xf32>, vector<1x8x4xf32>, vector<1x8x4xf32>, vector<1x8x4xf32> -> vector<16x8x4xf32>
    %110 = vector.extract_strided_slice %43 {offsets = [0, 64], sizes = [8, 4], strides = [1, 1]} : vector<16x96xf32> to vector<8x4xf32>
    %111 = vector.extract_strided_slice %43 {offsets = [0, 68], sizes = [8, 4], strides = [1, 1]} : vector<16x96xf32> to vector<8x4xf32>
    %112 = vector.extract_strided_slice %43 {offsets = [0, 72], sizes = [8, 4], strides = [1, 1]} : vector<16x96xf32> to vector<8x4xf32>
    %113 = vector.extract_strided_slice %43 {offsets = [0, 76], sizes = [8, 4], strides = [1, 1]} : vector<16x96xf32> to vector<8x4xf32>
    %114 = vector.extract_strided_slice %43 {offsets = [0, 80], sizes = [8, 4], strides = [1, 1]} : vector<16x96xf32> to vector<8x4xf32>
    %115 = vector.extract_strided_slice %43 {offsets = [0, 84], sizes = [8, 4], strides = [1, 1]} : vector<16x96xf32> to vector<8x4xf32>
    %116 = vector.extract_strided_slice %43 {offsets = [0, 88], sizes = [8, 4], strides = [1, 1]} : vector<16x96xf32> to vector<8x4xf32>
    %117 = vector.extract_strided_slice %43 {offsets = [0, 92], sizes = [8, 4], strides = [1, 1]} : vector<16x96xf32> to vector<8x4xf32>
    %118 = vector.extract_strided_slice %43 {offsets = [8, 64], sizes = [8, 4], strides = [1, 1]} : vector<16x96xf32> to vector<8x4xf32>
    %119 = vector.extract_strided_slice %43 {offsets = [8, 68], sizes = [8, 4], strides = [1, 1]} : vector<16x96xf32> to vector<8x4xf32>
    %120 = vector.extract_strided_slice %43 {offsets = [8, 72], sizes = [8, 4], strides = [1, 1]} : vector<16x96xf32> to vector<8x4xf32>
    %121 = vector.extract_strided_slice %43 {offsets = [8, 76], sizes = [8, 4], strides = [1, 1]} : vector<16x96xf32> to vector<8x4xf32>
    %122 = vector.extract_strided_slice %43 {offsets = [8, 80], sizes = [8, 4], strides = [1, 1]} : vector<16x96xf32> to vector<8x4xf32>
    %123 = vector.extract_strided_slice %43 {offsets = [8, 84], sizes = [8, 4], strides = [1, 1]} : vector<16x96xf32> to vector<8x4xf32>
    %124 = vector.extract_strided_slice %43 {offsets = [8, 88], sizes = [8, 4], strides = [1, 1]} : vector<16x96xf32> to vector<8x4xf32>
    %125 = vector.extract_strided_slice %43 {offsets = [8, 92], sizes = [8, 4], strides = [1, 1]} : vector<16x96xf32> to vector<8x4xf32>
    %126 = vector.shape_cast %110 : vector<8x4xf32> to vector<1x8x4xf32>
    %127 = vector.shape_cast %111 : vector<8x4xf32> to vector<1x8x4xf32>
    %128 = vector.shape_cast %112 : vector<8x4xf32> to vector<1x8x4xf32>
    %129 = vector.shape_cast %113 : vector<8x4xf32> to vector<1x8x4xf32>
    %130 = vector.shape_cast %114 : vector<8x4xf32> to vector<1x8x4xf32>
    %131 = vector.shape_cast %115 : vector<8x4xf32> to vector<1x8x4xf32>
    %132 = vector.shape_cast %116 : vector<8x4xf32> to vector<1x8x4xf32>
    %133 = vector.shape_cast %117 : vector<8x4xf32> to vector<1x8x4xf32>
    %134 = vector.shape_cast %118 : vector<8x4xf32> to vector<1x8x4xf32>
    %135 = vector.shape_cast %119 : vector<8x4xf32> to vector<1x8x4xf32>
    %136 = vector.shape_cast %120 : vector<8x4xf32> to vector<1x8x4xf32>
    %137 = vector.shape_cast %121 : vector<8x4xf32> to vector<1x8x4xf32>
    %138 = vector.shape_cast %122 : vector<8x4xf32> to vector<1x8x4xf32>
    %139 = vector.shape_cast %123 : vector<8x4xf32> to vector<1x8x4xf32>
    %140 = vector.shape_cast %124 : vector<8x4xf32> to vector<1x8x4xf32>
    %141 = vector.shape_cast %125 : vector<8x4xf32> to vector<1x8x4xf32>
    %142 = tpu.concatenate %126, %127, %128, %129, %130, %131, %132, %133, %134, %135, %136, %137, %138, %139, %140, %141 in 0 : vector<1x8x4xf32>, vector<1x8x4xf32>, vector<1x8x4xf32>, vector<1x8x4xf32>, vector<1x8x4xf32>, vector<1x8x4xf32>, vector<1x8x4xf32>, vector<1x8x4xf32>, vector<1x8x4xf32>, vector<1x8x4xf32>, vector<1x8x4xf32>, vector<1x8x4xf32>, vector<1x8x4xf32>, vector<1x8x4xf32>, vector<1x8x4xf32>, vector<1x8x4xf32> -> vector<16x8x4xf32>
    %143 = arith.truncf %76 : vector<16x8x4xf32> to vector<16x8x4xbf16>
    %144 = arith.truncf %109 : vector<16x8x4xf32> to vector<16x8x4xbf16>
    "tpu.trace_start"() <{level = 10 : i32, message = "gqe,gke->gqk"}> : () -> ()
    %cst_23 = arith.constant dense<0.000000e+00> : vector<16x8x8xf32>
    %145 = tpu.matmul %143, %144, %cst_23 {dimension_numbers = #tpu.dot_dimension_numbers<[2], [2], [1], [1], [0, 0, 0, 1, 1, 1], [0], [0]>} : vector<16x8x4xbf16>, vector<16x8x4xbf16>, vector<16x8x8xf32> -> vector<16x8x8xf32>
    "tpu.trace_stop"() : () -> ()
    %cst_24 = arith.constant dense<0xFF800000> : vector<16x8xf32>
    %146 = vector.multi_reduction <maximumf>, %145, %cst_24 [2] : vector<16x8x8xf32> to vector<16x8xf32>
    %147 = vector.shape_cast %146 : vector<16x8xf32> to vector<16x8x1xf32>
    %148 = vector.broadcast %147 : vector<16x8x1xf32> to vector<16x8x8xf32>
    %149 = arith.subf %145, %148 : vector<16x8x8xf32>
    %150 = math.exp %149 : vector<16x8x8xf32>
    %cst_25 = arith.constant dense<0.000000e+00> : vector<16x8xf32>
    %151 = vector.multi_reduction <add>, %150, %cst_25 [2] : vector<16x8x8xf32> to vector<16x8xf32>
    %152 = vector.shape_cast %151 : vector<16x8xf32> to vector<16x8x1xf32>
    %153 = tpu.reciprocal %152 {approx = true} : vector<16x8x1xf32> -> vector<16x8x1xf32>
    %154 = vector.broadcast %153 : vector<16x8x1xf32> to vector<16x8x8xf32>
    %155 = arith.mulf %150, %154 : vector<16x8x8xf32>
    %156 = arith.truncf %155 : vector<16x8x8xf32> to vector<16x8x8xbf16>
    %157 = arith.truncf %142 : vector<16x8x4xf32> to vector<16x8x4xbf16>
    "tpu.trace_start"() <{level = 10 : i32, message = "gqk,gke->gqe"}> : () -> ()
    %cst_26 = arith.constant dense<0.000000e+00> : vector<16x8x4xf32>
    %158 = tpu.matmul %156, %157, %cst_26 {dimension_numbers = #tpu.dot_dimension_numbers<[2], [1], [1], [2], [0, 0, 0, 1, 1, 2], [0], [0]>} : vector<16x8x8xbf16>, vector<16x8x4xbf16>, vector<16x8x4xf32> -> vector<16x8x4xf32>
    "tpu.trace_stop"() : () -> ()
    %c0_27 = arith.constant 0 : index
    %c0_28 = arith.constant 0 : index
    %c0_29 = arith.constant 0 : index
    %c0_30 = arith.constant 0 : index
    %159 = vector.load %arg5[%c0_27, %c0_28, %c0_29, %c0_30] : memref<1x8x4x32xbf16, #tpu.memory_space<vmem>>, vector<1x8x4x32xbf16>
    %160 = vector.shape_cast %159 : vector<1x8x4x32xbf16> to vector<8x4x32xbf16>
    %161 = vector.extract_strided_slice %158 {offsets = [0, 0, 0], sizes = [8, 8, 4], strides = [1, 1, 1]} : vector<16x8x4xf32> to vector<8x8x4xf32>
    %162 = arith.truncf %161 : vector<8x8x4xf32> to vector<8x8x4xbf16>
    "tpu.trace_start"() <{level = 10 : i32, message = "hne,hed->hnd"}> : () -> ()
    %cst_31 = arith.constant dense<0.000000e+00> : vector<8x8x32xf32>
    %163 = tpu.matmul %162, %160, %cst_31 {dimension_numbers = #tpu.dot_dimension_numbers<[2], [1], [1], [2], [0, 0, 0, 1, 1, 2], [0], [0]>} : vector<8x8x4xbf16>, vector<8x4x32xbf16>, vector<8x8x32xf32> -> vector<8x8x32xf32>
    "tpu.trace_stop"() : () -> ()
    %cst_32 = arith.constant dense<0.000000e+00> : vector<8x32xf32>
    %164 = vector.multi_reduction <add>, %163, %cst_32 [0] : vector<8x8x32xf32> to vector<8x32xf32>
    %165 = vector.extract_strided_slice %158 {offsets = [8, 0, 0], sizes = [8, 8, 4], strides = [1, 1, 1]} : vector<16x8x4xf32> to vector<8x8x4xf32>
    %166 = arith.truncf %165 : vector<8x8x4xf32> to vector<8x8x4xbf16>
    "tpu.trace_start"() <{level = 10 : i32, message = "hne,hed->hnd"}> : () -> ()
    %cst_33 = arith.constant dense<0.000000e+00> : vector<8x8x32xf32>
    %167 = tpu.matmul %166, %160, %cst_33 {dimension_numbers = #tpu.dot_dimension_numbers<[2], [1], [1], [2], [0, 0, 0, 1, 1, 2], [0], [0]>} : vector<8x8x4xbf16>, vector<8x4x32xbf16>, vector<8x8x32xf32> -> vector<8x8x32xf32>
    "tpu.trace_stop"() : () -> ()
    %cst_34 = arith.constant dense<0.000000e+00> : vector<8x32xf32>
    %168 = vector.multi_reduction <add>, %167, %cst_34 [0] : vector<8x8x32xf32> to vector<8x32xf32>
    %169 = tpu.concatenate %164, %168 in 0 : vector<8x32xf32>, vector<8x32xf32> -> vector<16x32xf32>
    %170 = arith.addf %3, %169 : vector<16x32xf32>
    %171 = vector.shape_cast %9 : vector<32xf32> to vector<1x32xf32>
    %172 = vector.broadcast %171 : vector<1x32xf32> to vector<16x32xf32>
    %173 = arith.addf %170, %172 : vector<16x32xf32>
    %cst_35 = arith.constant dense<0.000000e+00> : vector<16xf32>
    %174 = vector.multi_reduction <add>, %173, %cst_35 [1] : vector<16x32xf32> to vector<16xf32>
    %175 = vector.shape_cast %174 : vector<16xf32> to vector<16x1xf32>
    %cst_36 = arith.constant 3.200000e+01 : f32
    %176 = vector.broadcast %cst_36 : f32 to vector<16x1xf32>
    %177 = arith.divf %175, %176 : vector<16x1xf32>
    %178 = vector.broadcast %177 : vector<16x1xf32> to vector<16x32xf32>
    %179 = arith.subf %173, %178 : vector<16x32xf32>
    %180 = arith.mulf %179, %179 : vector<16x32xf32>
    %cst_37 = arith.constant dense<0.000000e+00> : vector<16xf32>
    %181 = vector.multi_reduction <add>, %180, %cst_37 [1] : vector<16x32xf32> to vector<16xf32>
    %182 = vector.shape_cast %181 : vector<16xf32> to vector<16x1xf32>
    %cst_38 = arith.constant 3.200000e+01 : f32
    %183 = vector.broadcast %cst_38 : f32 to vector<16x1xf32>
    %184 = arith.divf %182, %183 : vector<16x1xf32>
    %185 = vector.broadcast %177 : vector<16x1xf32> to vector<16x32xf32>
    %186 = arith.subf %173, %185 : vector<16x32xf32>
    %cst_39 = arith.constant 9.99999974E-6 : f32
    %187 = vector.broadcast %cst_39 : f32 to vector<16x1xf32>
    %188 = arith.addf %184, %187 : vector<16x1xf32>
    %189 = math.rsqrt %188 : vector<16x1xf32>
    %190 = vector.broadcast %189 : vector<16x1xf32> to vector<16x32xf32>
    %191 = arith.mulf %186, %190 : vector<16x32xf32>
    %192 = vector.shape_cast %11 : vector<32xf32> to vector<1x32xf32>
    %193 = vector.broadcast %192 : vector<1x32xf32> to vector<16x32xf32>
    %194 = arith.mulf %191, %193 : vector<16x32xf32>
    %195 = vector.shape_cast %13 : vector<32xf32> to vector<1x32xf32>
    %196 = vector.broadcast %195 : vector<1x32xf32> to vector<16x32xf32>
    %197 = arith.addf %194, %196 : vector<16x32xf32>
    %198 = arith.truncf %197 : vector<16x32xf32> to vector<16x32xbf16>
    %c0_40 = arith.constant 0 : index
    %c0_41 = arith.constant 0 : index
    %c0_42 = arith.constant 0 : index
    %199 = vector.load %arg7[%c0_40, %c0_41, %c0_42] : memref<1x32x128xbf16, #tpu.memory_space<vmem>>, vector<1x32x128xbf16>
    %200 = vector.shape_cast %199 : vector<1x32x128xbf16> to vector<32x128xbf16>
    %cst_43 = arith.constant dense<0.000000e+00> : vector<16x128xf32>
    %201 = tpu.matmul %198, %200, %cst_43 {dimension_numbers = #tpu.dot_dimension_numbers<[1], [0], [0], [1], [0, 0, 1, 1], [], []>} : vector<16x32xbf16>, vector<32x128xbf16>, vector<16x128xf32> -> vector<16x128xf32>
    %c0_44 = arith.constant 0 : index
    %c0_45 = arith.constant 0 : index
    %c0_46 = arith.constant 0 : index
    %202 = vector.load %arg8[%c0_44, %c0_45, %c0_46] : memref<1x1x128xf32, #tpu.memory_space<vmem>>, vector<1x1x128xf32>
    %203 = vector.shape_cast %202 : vector<1x1x128xf32> to vector<128xf32>
    %204 = vector.shape_cast %203 : vector<128xf32> to vector<1x128xf32>
    %205 = vector.broadcast %204 : vector<1x128xf32> to vector<16x128xf32>
    %206 = arith.addf %201, %205 : vector<16x128xf32>
    %cst_47 = arith.constant 0.636619746 : f32
    %207 = math.sqrt %cst_47 : f32
    %cst_48 = arith.constant 5.000000e-01 : f32
    %208 = vector.broadcast %cst_48 : f32 to vector<16x128xf32>
    %209 = arith.mulf %208, %206 : vector<16x128xf32>
    %210 = arith.mulf %206, %206 : vector<16x128xf32>
    %211 = arith.mulf %206, %210 : vector<16x128xf32>
    %cst_49 = arith.constant 4.471500e-02 : f32
    %212 = vector.broadcast %cst_49 : f32 to vector<16x128xf32>
    %213 = arith.mulf %212, %211 : vector<16x128xf32>
    %214 = arith.addf %206, %213 : vector<16x128xf32>
    %215 = vector.broadcast %207 : f32 to vector<16x128xf32>
    %216 = arith.mulf %215, %214 : vector<16x128xf32>
    %217 = math.tanh %216 : vector<16x128xf32>
    %cst_50 = arith.constant 1.000000e+00 : f32
    %218 = vector.broadcast %cst_50 : f32 to vector<16x128xf32>
    %219 = arith.addf %218, %217 : vector<16x128xf32>
    %220 = arith.mulf %209, %219 : vector<16x128xf32>
    %221 = arith.truncf %220 : vector<16x128xf32> to vector<16x128xbf16>
    %c0_51 = arith.constant 0 : index
    %c0_52 = arith.constant 0 : index
    %c0_53 = arith.constant 0 : index
    %222 = vector.load %arg9[%c0_51, %c0_52, %c0_53] : memref<1x128x32xbf16, #tpu.memory_space<vmem>>, vector<1x128x32xbf16>
    %223 = vector.shape_cast %222 : vector<1x128x32xbf16> to vector<128x32xbf16>
    %cst_54 = arith.constant dense<0.000000e+00> : vector<16x32xf32>
    %224 = tpu.matmul %221, %223, %cst_54 {dimension_numbers = #tpu.dot_dimension_numbers<[1], [0], [0], [1], [0, 0, 1, 1], [], []>} : vector<16x128xbf16>, vector<128x32xbf16>, vector<16x32xf32> -> vector<16x32xf32>
    %225 = arith.addf %173, %224 : vector<16x32xf32>
    %226 = vector.shape_cast %15 : vector<32xf32> to vector<1x32xf32>
    %227 = vector.broadcast %226 : vector<1x32xf32> to vector<16x32xf32>
    %228 = arith.addf %225, %227 : vector<16x32xf32>
    %c0_55 = arith.constant 0 : index
    %c0_56 = arith.constant 0 : index
    %229 = vector.load %arg11[%c0_55, %c0_56] : memref<16x32xf32, #tpu.memory_space<vmem>>, vector<16x32xf32>
    tpu.vector_store %arg11[%c0_55, %c0_56], %228 {strides = array<i32>} : memref<16x32xf32, #tpu.memory_space<vmem>>, vector<16x32xf32>,
    %c2_i32 = arith.constant 2 : i32
    %230 = arith.cmpi eq, %arg1, %c2_i32 : i32
    %231 = arith.extui %230 : i1 to i32
    %c0_i32_57 = arith.constant 0 : i32
    %232 = arith.cmpi ne, %231, %c0_i32_57 : i32
    scf.if %232 {
      %c0_58 = arith.constant 0 : index
      %c0_59 = arith.constant 0 : index
      %233 = vector.load %arg12[%c0_58, %c0_59] : memref<16x32xf32, #tpu.memory_space<vmem>>, vector<16x32xf32>
      %234 = arith.addf %228, %233 : vector<16x32xf32>
      %235 = vector.extract_strided_slice %234 {offsets = [0, 0], sizes = [8, 32], strides = [1, 1]} : vector<16x32xf32> to vector<8x32xf32>
      %c0_60 = arith.constant 0 : index
      %c0_61 = arith.constant 0 : index
      %c0_62 = arith.constant 0 : index
      %236 = vector.load %arg10[%c0_60, %c0_61, %c0_62] : memref<2x8x32xf32, #tpu.memory_space<vmem>>, vector<1x8x32xf32>
      %237 = vector.shape_cast %236 : vector<1x8x32xf32> to vector<8x32xf32>
      %238 = vector.shape_cast %235 : vector<8x32xf32> to vector<1x8x32xf32>
      tpu.vector_store %arg10[%c0_60, %c0_61, %c0_62], %238 {strides = array<i32>} : memref<2x8x32xf32, #tpu.memory_space<vmem>>, vector<1x8x32xf32>,
      %239 = vector.extract_strided_slice %234 {offsets = [8, 0], sizes = [8, 32], strides = [1, 1]} : vector<16x32xf32> to vector<8x32xf32>
      %c1_63 = arith.constant 1 : index
      %c0_64 = arith.constant 0 : index
      %c0_65 = arith.constant 0 : index
      %240 = vector.load %arg10[%c1_63, %c0_64, %c0_65] : memref<2x8x32xf32, #tpu.memory_space<vmem>>, vector<1x8x32xf32>
      %241 = vector.shape_cast %240 : vector<1x8x32xf32> to vector<8x32xf32>
      %242 = vector.shape_cast %239 : vector<8x32xf32> to vector<1x8x32xf32>
      tpu.vector_store %arg10[%c1_63, %c0_64, %c0_65], %242 {strides = array<i32>} : memref<2x8x32xf32, #tpu.memory_space<vmem>>, vector<1x8x32xf32>,
    } else {
    }
    return
  }
  func.func @transform_0(%arg0: i32, %arg1: i32) -> (i32, i32, i32) {
    %c0_i32 = arith.constant 0 : i32
    %c0_i32_0 = arith.constant 0 : i32
    %c0_i32_1 = arith.constant 0 : i32
    return %arg0, %c0_i32, %c0_i32_0 : i32, i32, i32
  }
  func.func @transform_1(%arg0: i32, %arg1: i32) -> (i32, i32) {
    %c0_i32 = arith.constant 0 : i32
    %c0_i32_0 = arith.constant 0 : i32
    %c0_i32_1 = arith.constant 0 : i32
    return %c0_i32, %c0_i32_0 : i32, i32
  }
  func.func @transform_2(%arg0: i32, %arg1: i32) -> (i32, i32, i32) {
    %c0_i32 = arith.constant 0 : i32
    %c0_i32_0 = arith.constant 0 : i32
    %c0_i32_1 = arith.constant 0 : i32
    return %arg1, %c0_i32, %c0_i32_0 : i32, i32, i32
  }
  func.func @transform_3(%arg0: i32, %arg1: i32) -> (i32, i32, i32, i32) {
    %c0_i32 = arith.constant 0 : i32
    %c0_i32_0 = arith.constant 0 : i32
    %c0_i32_1 = arith.constant 0 : i32
    %c0_i32_2 = arith.constant 0 : i32
    return %arg1, %c0_i32, %c0_i32_0, %c0_i32_1 : i32, i32, i32, i32
  }
  func.func @transform_4(%arg0: i32, %arg1: i32) -> (i32, i32, i32) {
    %c0_i32 = arith.constant 0 : i32
    %c0_i32_0 = arith.constant 0 : i32
    %c0_i32_1 = arith.constant 0 : i32
    return %arg1, %c0_i32, %c0_i32_0 : i32, i32, i32
  }
  func.func @transform_5(%arg0: i32, %arg1: i32) -> (i32, i32, i32) {
    %c0_i32 = arith.constant 0 : i32
    %c0_i32_0 = arith.constant 0 : i32
    %c0_i32_1 = arith.constant 0 : i32
    return %arg1, %c0_i32, %c0_i32_0 : i32, i32, i32
  }
  func.func @transform_6(%arg0: i32, %arg1: i32) -> (i32, i32, i32) {
    %c0_i32 = arith.constant 0 : i32
    %c0_i32_0 = arith.constant 0 : i32
    %c0_i32_1 = arith.constant 0 : i32
    return %arg1, %c0_i32, %c0_i32_0 : i32, i32, i32
  }
  func.func @transform_7(%arg0: i32, %arg1: i32) -> (i32, i32, i32) {
    %c0_i32 = arith.constant 0 : i32
    %c0_i32_0 = arith.constant 0 : i32
    %c0_i32_1 = arith.constant 0 : i32
    return %arg1, %c0_i32, %c0_i32_0 : i32, i32, i32
  }
  func.func @transform_8(%arg0: i32, %arg1: i32) -> (i32, i32, i32) {
    %c0_i32 = arith.constant 0 : i32
    %c0_i32_0 = arith.constant 0 : i32
    %c0_i32_1 = arith.constant 0 : i32
    return %arg0, %c0_i32, %c0_i32_0 : i32, i32, i32
  }
}

</mosaic_0001>

<bundles_post_ra>
// kernel: tpu_custom_call.1
= control target key start
LH: loop header
LB: loop body
LE: loop exit
PB: predicated region body
PF: predicated region fallthrough
CT: control target
= control target key end

     0   :  { %s5106_s0 = inlined_call_operand.vmem [shape: f32[2,8,32], index: 0, kind: input, shape index: {}]   ;;  %s5107_s1 = inlined_call_operand.vmem [shape: f32[1,32], index: 1, kind: input, shape index: {}]   ;;  %s5108_s2 = inlined_call_operand.vmem [shape: bf16[3,32,96], index: 2, kind: input, shape index: {}]   ;;  %s5109_s3 = inlined_call_operand.vmem [shape: bf16[3,8,4,32], index: 3, kind: input, shape index: {}]   ;;  %s5110_s4 = inlined_call_operand.vmem [shape: f32[3,6,32], index: 4, kind: input, shape index: {}]   ;;  %s5111_s5 = inlined_call_operand.vmem [shape: bf16[3,32,128], index: 5, kind: input, shape index: {}]   ;;  %s5112_s6 = inlined_call_operand.vmem [shape: f32[3,1,128], index: 6, kind: input, shape index: {}]   ;;  %s5113_s7 = inlined_call_operand.vmem [shape: bf16[3,128,32], index: 7, kind: input, shape index: {}]   ;;  %s5114_s8 = inlined_call_operand.hbm [shape: f32[2,8,32], index: 8, kind: output, shape index: {}]  }
   0x1   :  { %5115 = sst [smem:[#allocation7_spill]] %s5108_s2 }
   0x2   :  { %13 = vsyncpa [#allocation5], 0  ;;  %s4354_s27 = smov 0   ;;  %s4356_s28 = smov 0  }
   0x3   :  { %s4358_s29 = smov 0  }
   0x4 LB: > { %s28_s9 = sadd.s32 1, %s4289_s28  ;;  %p3565_p1 = scmp.ge.s32.totalorder %s4293_s29, 1  ;;  %s4293_s29 = sphi %s4358_s29, %s19_s29   ;;  %s4289_s28 = sphi %s4356_s28, %s5120_s28   ;;  %s4285_s27 = sphi %s4354_s27, %s5119_s27  }
   0x5   : > { %p29_p0 = scmp.ge.s32.totalorder %s28_s9, 3  ;;  %p333_p2 = scmp.lt.s32.totalorder %s4293_s29, 4 }
   0x7   : > { %s5122_s9 = smov (%p29_p0, %s28_s9), 0  ;;  %p334_p3 = pnand %p3565_p1, %p333_p2 }
   0x8   : > { %p395_p4 = scmp.lt.s32.totalorder (!%p334_p3), %s4285_s27, 2  ;;  %s5116_s2 = sld [smem:[#allocation7_spill]] (!%p334_p3) }
   0x9   : > { %337 = sbr.rel (%p334_p3) target bundleno = 2896 (0xb50), region = 52  ;;  %p3575_p5 = scmp.ne.s32.totalorder (!%p334_p3), %s4285_s27, 0 }
  0x10   : > { %s4377_s10 = scalar_select %p395_p4, %s4285_s27, 2 }
  0x11   : > { %427 = sbr.rel (%p3575_p5) target bundleno = 209 (0xd1), region = 56  ;;  %v428_v0 = vld [vmem:[%s5106_s0] sm:$0xff] (!%p3575_p5)  ;;  %vm429_vm0 = vcmask (!%p3575_p5), 261120   ;;  %v3576_v1 = vld [vmem:[%s5106_s0 + $0x8] sm:$0xff] (!%p3575_p5) }
  0x12   : > { %s3652_s11 = sshll.u32 %s4377_s10, 4  ;;  %s3570_s12 = sshll.u32 %s4377_s10, 3  ;;  %430 = vst.msk [vmem:[#allocation2] sm:$0xff] (!%p3575_p5), %vm429_vm0, %v428_v0  ;;  %433 = vst.msk [vmem:[#allocation2 + $0x8] sm:$0xff] (!%p3575_p5), %vm429_vm0, %v3576_v1  ;;  %v3577_v2 = vld [vmem:[%s5107_s1] ss:$0 sm:$0xff] (!%p3575_p5) }
  0x13   : > { %s4384_s15 = scalar_lea.vmem %s5116_s2, %s3652_s11  ;;  %s4389_s18 = scalar_lea.vmem %s5109_s3, %s3652_s11 }
  0x14   : > { %s4394_s21 = scalar_lea.vmem %s5110_s4, %s3570_s12  ;;  %s4399_s24 = scalar_lea.vmem %s5111_s5, %s3652_s11 }
  0x15   : > { %s416_s13 = scalar_lea.vmem %s5112_s6, %s4377_s10  ;;  %s3655_s14 = sshll.u32 %s4377_s10, 6 }
  0x16   : > { %s4409_s16 = scalar_lea.vmem %s5113_s7, %s3655_s14 }
  0x19   : > { %v434_v3 = vld [vmem:[#allocation2] sm:$0xff]  ;;  %v435_v4 = vld [vmem:[#allocation2 + $0x8] sm:$0xff] }
  0x1a   : > { %v443_v5 = vmul.f32 %v3577_v2, %v434_v3  ;;  %v444_v6 = vmul.f32 %v3577_v2, %v435_v4 }
  0x1c   : > { %v445_v7 = vsel %vm429_vm0, %v443_v5, 0.0  ;;  %v448_v8 = vsel %vm429_vm0, %v444_v6, 0.0 }
  0x1d   : > { %446 = vadd.xlane.f32.xlu0 %v445_v7 }
  0x21   : > { %449 = vadd.xlane.f32.xlu0 %v448_v8 }
  0xaa   : > { %v447_v9 = vpop.xlane.xlu0 %446 }
  0xab   : > { %v451_v10 = vmax.f32 %v447_v9, 0.0  ;;  %v453_v11 = vmin.f32 %v447_v9, 0.0  ;;  %vm459_vm1 = vcmp.ge.f32.partialorder %v447_v9, 0.0 }
  0xad   : > { %v455_v12 = vmul.f32 1.442695, %v453_v11  ;;  %v461_v13 = vsub.f32 0.0, %v451_v10 }
  0xae   : > { %v450_v14 = vpop.xlane.xlu0 %449 }
  0xaf   : > { %4135 = vpow2.f32 %v455_v12  ;;  %v463_v15 = vmul.f32 1.442695, %v461_v13  ;;  %v452_v16 = vmax.f32 %v450_v14, 0.0  ;;  %v454_v17 = vmin.f32 %v450_v14, 0.0 }
  0xb0   : > { %vm460_vm2 = vcmp.ge.f32.partialorder %v450_v14, 0.0 }
  0xb1   : > { %4137 = vpow2.f32 %v463_v15  ;;  %v457_v18 = vmul.f32 1.442695, %v454_v17  ;;  %v462_v19 = vsub.f32 0.0, %v452_v16 }
  0xb3   : > { %4139 = vpow2.f32 %v457_v18  ;;  %v465_v20 = vmul.f32 1.442695, %v462_v19 }
  0xb5   : > { %4141 = vpow2.f32 %v465_v20 }
  0xb9   : > { %v4136_v21 = vpop.eup %4135 }
  0xba   : > { %v473_v22 = vadd.f32 1.0, %v4136_v21 }
  0xbb   : > { %v4138_v23 = vpop.eup %4137 }
  0xbc   : > { %v467_v24 = vadd.f32 1.0, %v4138_v23  ;;  %4143 = vrcp.f32 %v473_v22 }
  0xbd   : > { %v4140_v25 = vpop.eup %4139 }
  0xbe   : > { %4145 = vrcp.f32 %v467_v24  ;;  %v474_v26 = vadd.f32 1.0, %v4140_v25 }
  0xbf   : > { %v4142_v27 = vpop.eup %4141 }
  0xc0   : > { %v468_v28 = vadd.f32 1.0, %v4142_v27  ;;  %4147 = vrcp.f32 %v474_v26 }
  0xc2   : > { %4149 = vrcp.f32 %v468_v28 }
  0xc6   : > { %v4144_v29 = vpop.eup %4143 }
  0xc7   : > { %v476_v30 = vmul.f32 %v4144_v29, %v4136_v21 }
  0xc8   : > { %v4146_v31 = vpop.eup %4145 }
  0xc9   : > { %v479_v32 = vsel %vm459_vm1, %v4146_v31, %v476_v30 }
  0xca   : > { %v4148_v33 = vpop.eup %4147  ;;  %v481_v34 = vmul.f32 %v479_v32, %v434_v3 }
  0xcb   : > { %v478_v35 = vmul.f32 %v4148_v33, %v4140_v25 }
  0xcc   : > { %v4150_v36 = vpop.eup %4149  ;;  %483 = vst.msk [vmem:[#allocation3] sm:$0xff] %vm429_vm0, %v481_v34 }
  0xcd   : > { %v480_v37 = vsel %vm460_vm2, %v4150_v36, %v478_v35 }
  0xce   : > { %v482_v38 = vmul.f32 %v480_v37, %v435_v4 }
  0xd0   : > { %484 = vst.msk [vmem:[#allocation3 + $0x8] sm:$0xff] %vm429_vm0, %v482_v38 }
  0xd1 PF: > { %vm493_vm3 = vcmask 261120   ;;  %v4151_v53 = vld [vmem:[%s4384_s15] sm:$0xff]   ;;  %v4295_v54 = vmov 0.0   ;;  %v4152_v55 = vld [vmem:[%s4384_s15 + $0x8] sm:$0xff]   ;;  %vm4296_vm4 = vmmov 0   ;;  %s4297_s30 = smov 120  }
  0xd2   : > { %v485_v39 = vld [vmem:[#allocation2] sm:$0xff]  ;;  %v486_v40 = vld [vmem:[#allocation2 + $0x8] sm:$0xff]  ;;  %3767 = vmatprep.subr.bf16.mxu1 %v4295_v54  ;;  %3793 = vmatprep.subr.bf16.mxu0 %v4295_v54  ;;  %s4298_s15 = smov 124   ;;  %s4299_s22 = smov 116   ;;  %vm657_vm5 = vcmask 31744   ;;  %vm1637_vm6 = vcmask 1043456  }
  0xd3   : > { %v494_v41 = vsel %vm493_vm3, %v485_v39, 0.0  ;;  %v497_v42 = vsel %vm493_vm3, %v486_v40, 0.0  ;;  %3768 = vmatpush3.bf16.msra.mxu1 %v4151_v53  ;;  %3771 = vmatprep.mubr.msk.bf16.mxu1 %vm4296_vm4, %v4295_v54  ;;  %v3578_v0 = vld [vmem:[%s4394_s21] ss:$0 sm:$0xff]  ;;  %v3579_v4 = vld [vmem:[%s4394_s21 + $0x1] ss:$0 sm:$0xff] }
  0xd4   : > { %495 = vadd.xlane.f32.xlu0 %v494_v41  ;;  %3769 = vmatprep.subr.bf16.mxu1 %v4295_v54  ;;  %s4300_s23 = smov 108   ;;  %s4301_s25 = smov 112   ;;  %vm1439_vm7 = vcmask 64512   ;;  %vm2420_vm8 = vcmask 1041408  }
  0xd5   : > { %3795 = vmatprep.mubr.msk.bf16.mxu0 %vm4296_vm4, %v4295_v54  ;;  %s4302_s26 = smov 100   ;;  %s4303_s14 = smov 104  }
  0xd6   : > { %s4304_s12 = smov 96   ;;  %s4305_s17 = smov 64  }
  0xd7   : > { %3770 = vmatpush3.bf16.msra.mxu1 %v4152_v55  ;;  %p3647_p6 = scmp.ne.s32.totalorder %s4285_s27, 2 }
  0xd8   : > { %498 = vadd.xlane.f32.xlu0 %v497_v42  ;;  %3775 = vmatprep.subr.bf16.mxu1 %v4295_v54 }
 0x161   : > { %v496_v43 = vpop.xlane.xlu0 %495 }
 0x162   : > { %v501_v44 = vmul.f32 0.03125, %v496_v43 }
 0x164   : > { %v503_v45 = vsub.f32 %v485_v39, %v501_v44 }
 0x165   : > { %v499_v46 = vpop.xlane.xlu0 %498 }
 0x166   : > { %v502_v47 = vmul.f32 0.03125, %v499_v46  ;;  %v505_v48 = vmul.f32 %v503_v45, %v503_v45 }
 0x168   : > { %v504_v49 = vsub.f32 %v486_v40, %v502_v47  ;;  %v507_v50 = vsel %vm493_vm3, %v505_v48, 0.0 }
 0x169   : > { %508 = vadd.xlane.f32.xlu1 %v507_v50 }
 0x16a   : > { %v506_v51 = vmul.f32 %v504_v49, %v504_v49 }
 0x16c   : > { %v510_v52 = vsel %vm493_vm3, %v506_v51, 0.0 }
 0x16d   : > { %511 = vadd.xlane.f32.xlu1 %v510_v52 }
 0x1f6   : > { %v509_v56 = vpop.xlane.xlu1 %508 }
 0x1f7   : > { %v513_v57 = vmul.f32 0.03125, %v509_v56 }
 0x1f9   : > { %v515_v58 = vadd.f32 1e-05, %v513_v57 }
 0x1fa   : > { %v512_v59 = vpop.xlane.xlu1 %511 }
 0x1fb   : > { %4163 = vrsqrt.f32 %v515_v58  ;;  %v514_v60 = vmul.f32 0.03125, %v512_v59 }
 0x1fd   : > { %v516_v61 = vadd.f32 1e-05, %v514_v60 }
 0x1ff   : > { %4165 = vrsqrt.f32 %v516_v61 }
 0x205   : > { %v4164_v62 = vpop.eup %4163 }
 0x206   : > { %v519_v63 = vmul.f32 %v4164_v62, %v503_v45 }
 0x208   : > { %v525_v3 = vmul.f32 %v3578_v0, %v519_v63 }
 0x209   : > { %v4166_v1 = vpop.eup %4165 }
 0x20a   : > { %v520_v2 = vmul.f32 %v4166_v1, %v504_v49  ;;  %v531_v6 = vadd.f32 %v3579_v4, %v525_v3 }
 0x20c   : > { %v526_v5 = vmul.f32 %v3578_v0, %v520_v2 }
 0x20e   : > { %v532_v7 = vadd.f32 %v3579_v4, %v526_v5 }
 0x210   : > { %v533_v8 = vpack.c.bf16 %v532_v7, %v531_v6 }
 0x212   : > { %3772 = vmatmul.mubr.msk.bf16.vlgmr.msra.gmra.mrb[0].mxu1 %vm493_vm3, %v533_v8 }
 0x213   : > { %3777 = vmatprep.mubr.msk.bf16.mxu1 %vm4296_vm4, %v4295_v54 }
 0x2e5   : > { %v587_v9 = vpop.f32.mrb[0].mxu1 }
 0x2e6   : > { %598 = vrot.lane.b32.xlu1 %v587_v9, %s4297_s30  ;;  %595 = vrot.lane.b32.xlu0 %v587_v9, %s4298_s15  ;;  %v3773_v10 = vpop.f32.mrb[1].mxu1  ;;  %v638_v13 = vpack.c.bf16 %v587_v9, %v587_v9 }
 0x2e7   : > { %v590_v11 = vpop.f32.mrb[2].mxu1 }
 0x2e8   : > { %v3774_v12 = vpop.f32.mrb[3].mxu1  ;;  %v4477_v32 = vpack.c.bf16 %v590_v11, %v590_v11 }
 0x2ea   : > { %601 = vrot.lane.b32.xlu1 %v587_v9, %s4299_s22  ;;  %607 = vrot.lane.b32.xlu0 %v587_v9, %s4300_s23 }
 0x2ee   : > { %604 = vrot.lane.b32.xlu1 %v587_v9, %s4301_s25  ;;  %613 = vrot.lane.b32.xlu0 %v587_v9, %s4302_s26 }
 0x2f2   : > { %610 = vrot.lane.b32.xlu1 %v587_v9, %s4303_s14  ;;  %620 = vrot.lane.b32.xlu0 %v590_v11, %s4297_s30 }
 0x2f6   : > { %626 = vrot.lane.b32.xlu0 %v590_v11, %s4301_s25  ;;  %617 = vrot.lane.b32.xlu1 %v590_v11, %s4298_s15 }
 0x2fa   : > { %655 = vrot.lane.b32.xlu0 %v638_v13, %s4304_s12  ;;  %623 = vrot.lane.b32.xlu1 %v590_v11, %s4299_s22 }
 0x2fe   : > { %635 = vrot.lane.b32.xlu0 %v590_v11, %s4302_s26  ;;  %629 = vrot.lane.b32.xlu1 %v590_v11, %s4300_s23 }
 0x302   : > { %632 = vrot.lane.b32.xlu1 %v590_v11, %s4303_s14 }
 0x358   : > { %v599_v14 = vpop.permute.xlu1 %598  ;;  %v596_v15 = vpop.permute.xlu0 %595 }
 0x359   : > { %v4447_v16 = vpack.c.bf16 %v599_v14, %v599_v14  ;;  %v4449_v17 = vpack.c.bf16 %v596_v15, %v596_v15 }
 0x35b   : > { %754 = vrot.lane.b32.xlu0 %v4447_v16, %s4304_s12  ;;  %705 = vrot.lane.b32.xlu1 %v4449_v17, %s4304_s12 }
 0x35c   : > { %v602_v18 = vpop.permute.xlu1 %601  ;;  %v608_v19 = vpop.permute.xlu0 %607 }
 0x35d   : > { %v4455_v20 = vpack.c.bf16 %v602_v18, %v602_v18  ;;  %v4459_v23 = vpack.c.bf16 %v608_v19, %v608_v19 }
 0x35f   : > { %803 = vrot.lane.b32.xlu1 %v4455_v20, %s4304_s12 }
 0x360   : > { %v605_v21 = vpop.permute.xlu1 %604  ;;  %v614_v22 = vpop.permute.xlu0 %613 }
 0x361   : > { %v4461_v24 = vpack.c.bf16 %v605_v21, %v605_v21  ;;  %v4467_v27 = vpack.c.bf16 %v614_v22, %v614_v22 }
 0x363   : > { %852 = vrot.lane.b32.xlu0 %v4461_v24, %s4304_s12  ;;  %901 = vrot.lane.b32.xlu1 %v4459_v23, %s4304_s12 }
 0x364   : > { %v611_v25 = vpop.permute.xlu1 %610  ;;  %v621_v26 = vpop.permute.xlu0 %620 }
 0x365   : > { %v4469_v28 = vpack.c.bf16 %v611_v25, %v611_v25  ;;  %v4483_v35 = vpack.c.bf16 %v621_v26, %v621_v26 }
 0x367   : > { %950 = vrot.lane.b32.xlu0 %v4469_v28, %s4304_s12  ;;  %999 = vrot.lane.b32.xlu1 %v4467_v27, %s4304_s12 }
 0x368   : > { %v627_v29 = vpop.permute.xlu0 %626  ;;  %v618_v30 = vpop.permute.xlu1 %617 }
 0x369   : > { %v4475_v31 = vpack.c.bf16 %v618_v30, %v618_v30  ;;  %v4493_v39 = vpack.c.bf16 %v627_v29, %v627_v29 }
 0x36b   : > { %1097 = vrot.lane.b32.xlu1 %v4475_v31, %s4304_s12  ;;  %1048 = vrot.lane.b32.xlu0 %v4477_v32, %s4304_s12 }
 0x36c   : > { %v656_v33 = vpop.permute.xlu0 %655  ;;  %v624_v34 = vpop.permute.xlu1 %623 }
 0x36d   : > { %v662_v36 = vsel %vm657_vm5, %v656_v33, 0  ;;  %v4486_v37 = vpack.c.bf16 %v624_v34, %v624_v34 }
 0x36e   : > { %3776 = vmatpush3.bf16.xpose.msra.mxu1 %v662_v36 }
 0x36f   : > { %1195 = vrot.lane.b32.xlu1 %v4486_v37, %s4304_s12  ;;  %1146 = vrot.lane.b32.xlu0 %v4483_v35, %s4304_s12 }
 0x370   : > { %v630_v38 = vpop.permute.xlu1 %629  ;;  %3781 = vmatprep.subr.bf16.mxu1 %v4295_v54  ;;  %v636_v41 = vpop.permute.xlu0 %635 }
 0x371   : > { %v4495_v40 = vpack.c.bf16 %v630_v38, %v630_v38  ;;  %v4501_v43 = vpack.c.bf16 %v636_v41, %v636_v41 }
 0x373   : > { %1293 = vrot.lane.b32.xlu1 %v4495_v40, %s4304_s12  ;;  %1244 = vrot.lane.b32.xlu0 %v4493_v39, %s4304_s12 }
 0x374   : > { %v633_v42 = vpop.permute.xlu1 %632 }
 0x375   : > { %v4503_v44 = vpack.c.bf16 %v633_v42, %v633_v42  ;;  %3778 = vmatmul.mubr.msk.bf16.vlgmr.msra.gmra.mrb[4].mxu1 %vm657_vm5, %v638_v13 }
 0x376   : > { %3783 = vmatprep.mubr.msk.bf16.mxu1 %vm4296_vm4, %v4295_v54 }
 0x377   : > { %1391 = vrot.lane.b32.xlu1 %v4501_v43, %s4304_s12  ;;  %1342 = vrot.lane.b32.xlu0 %v4503_v44, %s4304_s12 }
 0x37b   : > { %1632 = vrot.lane.b32.xlu1 %v638_v13, %s4305_s17  ;;  %1681 = vrot.lane.b32.xlu0 %v4449_v17, %s4305_s17 }
 0x37f   : > { %1777 = vrot.lane.b32.xlu1 %v4455_v20, %s4305_s17  ;;  %1729 = vrot.lane.b32.xlu0 %v4447_v16, %s4305_s17 }
 0x383   : > { %1825 = vrot.lane.b32.xlu0 %v4461_v24, %s4305_s17 }
 0x387   : > { %1873 = vrot.lane.b32.xlu0 %v4459_v23, %s4305_s17 }
 0x3cd   : > { %v706_v45 = vpop.permute.xlu1 %705  ;;  %v755_v49 = vpop.permute.xlu0 %754 }
 0x3ce   : > { %v711_v46 = vsel %vm657_vm5, %v706_v45, 0  ;;  %v760_v50 = vsel %vm657_vm5, %v755_v49, 0 }
 0x3cf   : > { %3782 = vmatpush3.bf16.xpose.msra.mxu1 %v711_v46 }
 0x3d0   : > { %3787 = vmatprep.subr.bf16.mxu1 %v4295_v54 }
 0x3d1   : > { %v804_v47 = vpop.permute.xlu1 %803 }
 0x3d2   : > { %v809_v48 = vsel %vm657_vm5, %v804_v47, 0 }
 0x3d3   : > { %3794 = vmatpush3.bf16.xpose.msra.mxu0 %v809_v48 }
 0x3d4   : > { %3805 = vmatprep.subr.bf16.mxu0 %v4295_v54 }
 0x3d5   : > { %v902_v51 = vpop.permute.xlu1 %901  ;;  %v853_v53 = vpop.permute.xlu0 %852 }
 0x3d6   : > { %3784 = vmatmul.mubr.msk.bf16.vlgmr.msra.gmra.mrb[8].mxu1 %vm657_vm5, %v4449_v17  ;;  %v907_v52 = vsel %vm657_vm5, %v902_v51, 0  ;;  %v858_v55 = vsel %vm657_vm5, %v853_v53, 0 }
 0x3d7   : > { %3788 = vmatpush3.bf16.xpose.msra.mxu1 %v760_v50  ;;  %3789 = vmatprep.mubr.msk.bf16.mxu1 %vm4296_vm4, %v4295_v54 }
 0x3d8   : > { %3799 = vmatprep.subr.bf16.mxu1 %v4295_v54 }
 0x3d9   : > { %v1000_v56 = vpop.permute.xlu1 %999  ;;  %v951_v58 = vpop.permute.xlu0 %950 }
 0x3da   : > { %3796 = vmatmul.mubr.msk.bf16.vlgmr.msra.gmra.mrb[0].mxu0 %vm657_vm5, %v4455_v20  ;;  %v1005_v57 = vsel %vm657_vm5, %v1000_v56, 0  ;;  %v956_v59 = vsel %vm657_vm5, %v951_v58, 0 }
 0x3db   : > { %3806 = vmatpush3.bf16.xpose.msra.mxu0 %v907_v52  ;;  %3807 = vmatprep.mubr.msk.bf16.mxu0 %vm4296_vm4, %v4295_v54 }
 0x3dc   : > { %3817 = vmatprep.subr.bf16.mxu0 %v4295_v54 }
 0x3dd   : > { %v1098_v60 = vpop.permute.xlu1 %1097  ;;  %v1049_v62 = vpop.permute.xlu0 %1048 }
 0x3de   : > { %3790 = vmatmul.mubr.msk.bf16.vlgmr.msra.gmra.mrb[12].mxu1 %vm657_vm5, %v4447_v16  ;;  %v1103_v61 = vsel %vm657_vm5, %v1098_v60, 0  ;;  %v1054_v63 = vsel %vm657_vm5, %v1049_v62, 0 }
 0x3df   : > { %3800 = vmatpush3.bf16.xpose.msra.mxu1 %v858_v55  ;;  %3801 = vmatprep.mubr.msk.bf16.mxu1 %vm4296_vm4, %v4295_v54 }
 0x3e0   : > { %3811 = vmatprep.subr.bf16.mxu1 %v4295_v54 }
 0x3e1   : > { %v1196_v0 = vpop.permute.xlu1 %1195  ;;  %v1147_v2 = vpop.permute.xlu0 %1146 }
 0x3e2   : > { %3808 = vmatmul.mubr.msk.bf16.vlgmr.msra.gmra.mrb[4].mxu0 %vm657_vm5, %v4459_v23  ;;  %v1201_v1 = vsel %vm657_vm5, %v1196_v0, 0  ;;  %v1152_v3 = vsel %vm657_vm5, %v1147_v2, 0 }
 0x3e3   : > { %3818 = vmatpush3.bf16.xpose.msra.mxu0 %v1005_v57  ;;  %3819 = vmatprep.mubr.msk.bf16.mxu0 %vm4296_vm4, %v4295_v54 }
 0x3e4   : > { %3829 = vmatprep.subr.bf16.mxu0 %v4295_v54 }
 0x3e5   : > { %v1294_v4 = vpop.permute.xlu1 %1293  ;;  %v1245_v6 = vpop.permute.xlu0 %1244 }
 0x3e6   : > { %3802 = vmatmul.mubr.msk.bf16.vlgmr.msra.gmra.mrb[16].mxu1 %vm657_vm5, %v4461_v24  ;;  %v1299_v5 = vsel %vm657_vm5, %v1294_v4, 0  ;;  %v1250_v7 = vsel %vm657_vm5, %v1245_v6, 0 }
 0x3e7   : > { %3812 = vmatpush3.bf16.xpose.msra.mxu1 %v956_v59  ;;  %3813 = vmatprep.mubr.msk.bf16.mxu1 %vm4296_vm4, %v4295_v54 }
 0x3e8   : > { %3823 = vmatprep.subr.bf16.mxu1 %v4295_v54 }
 0x3e9   : > { %v1392_v8 = vpop.permute.xlu1 %1391  ;;  %v1343_v9 = vpop.permute.xlu0 %1342 }
 0x3ea   : > { %3820 = vmatmul.mubr.msk.bf16.vlgmr.msra.gmra.mrb[8].mxu0 %vm657_vm5, %v4467_v27  ;;  %v1397_v10 = vsel %vm657_vm5, %v1392_v8, 0  ;;  %v1348_v11 = vsel %vm657_vm5, %v1343_v9, 0 }
 0x3eb   : > { %3830 = vmatpush3.bf16.xpose.msra.mxu0 %v1103_v61  ;;  %3831 = vmatprep.mubr.msk.bf16.mxu0 %vm4296_vm4, %v4295_v54 }
 0x3ec   : > { %3841 = vmatprep.subr.bf16.mxu0 %v4295_v54 }
 0x3ed   : > { %v1682_v12 = vpop.permute.xlu0 %1681  ;;  %v1633_v14 = vpop.permute.xlu1 %1632 }
 0x3ee   : > { %3814 = vmatmul.mubr.msk.bf16.vlgmr.msra.gmra.mrb[20].mxu1 %vm657_vm5, %v4469_v28  ;;  %v1687_v13 = vsel %vm1637_vm6, %v1682_v12, 0  ;;  %v1639_v15 = vsel %vm1637_vm6, %v1633_v14, 0 }
 0x3ef   : > { %3824 = vmatpush3.bf16.xpose.msra.mxu1 %v1054_v63  ;;  %3825 = vmatprep.mubr.msk.bf16.mxu1 %vm4296_vm4, %v4295_v54 }
 0x3f0   : > { %3835 = vmatprep.subr.bf16.mxu1 %v4295_v54 }
 0x3f2   : > { %3832 = vmatmul.mubr.msk.bf16.vlgmr.msra.gmra.mrb[12].mxu0 %vm657_vm5, %v4475_v31 }
 0x3f3   : > { %3842 = vmatpush3.bf16.xpose.msra.mxu0 %v1201_v1  ;;  %3843 = vmatprep.mubr.msk.bf16.mxu0 %vm4296_vm4, %v4295_v54 }
 0x3f4   : > { %3853 = vmatprep.subr.bf16.mxu0 %v4295_v54 }
 0x3f6   : > { %3826 = vmatmul.mubr.msk.bf16.vlgmr.msra.gmra.mrb[24].mxu1 %vm657_vm5, %v4477_v32 }
 0x3f7   : > { %3836 = vmatpush3.bf16.xpose.msra.mxu1 %v1152_v3  ;;  %3837 = vmatprep.mubr.msk.bf16.mxu1 %vm4296_vm4, %v4295_v54 }
 0x3f8   : > { %3847 = vmatprep.subr.bf16.mxu1 %v4295_v54 }
 0x3fa   : > { %3844 = vmatmul.mubr.msk.bf16.vlgmr.msra.gmra.mrb[16].mxu0 %vm657_vm5, %v4486_v37 }
 0x3fb   : > { %3854 = vmatpush3.bf16.xpose.msra.mxu0 %v1299_v5  ;;  %3855 = vmatprep.mubr.msk.bf16.mxu0 %vm4296_vm4, %v4295_v54 }
 0x3fc   : > { %3865 = vmatprep.subr.bf16.mxu0 %v4295_v54 }
 0x3fe   : > { %3838 = vmatmul.mubr.msk.bf16.vlgmr.msra.gmra.mrb[28].mxu1 %vm657_vm5, %v4483_v35 }
 0x3ff   : > { %3848 = vmatpush3.bf16.xpose.msra.mxu1 %v1250_v7  ;;  %3849 = vmatprep.mubr.msk.bf16.mxu1 %vm4296_vm4, %v4295_v54 }
 0x400   : > { %3859 = vmatprep.subr.bf16.mxu1 %v4295_v54 }
 0x402   : > { %3856 = vmatmul.mubr.msk.bf16.vlgmr.msra.gmra.mrb[20].mxu0 %vm657_vm5, %v4495_v40 }
 0x403   : > { %3866 = vmatpush3.bf16.xpose.msra.mxu0 %v1397_v10  ;;  %3867 = vmatprep.mubr.msk.bf16.mxu0 %vm4296_vm4, %v4295_v54 }
 0x404   : > { %3877 = vmatprep.subr.bf16.mxu0 %v4295_v54 }
 0x406   : > { %3850 = vmatmul.mubr.msk.bf16.vlgmr.msra.gmra.mrb[32].mxu1 %vm657_vm5, %v4493_v39 }
 0x407   : > { %3860 = vmatpush3.bf16.xpose.msra.mxu1 %v1348_v11  ;;  %3861 = vmatprep.mubr.msk.bf16.mxu1 %vm4296_vm4, %v4295_v54 }
 0x408   : > { %3871 = vmatprep.subr.bf16.mxu1 %v4295_v54 }
 0x40a   : > { %3868 = vmatmul.mubr.msk.bf16.vlgmr.msra.gmra.mrb[24].mxu0 %vm657_vm5, %v4501_v43 }
 0x40b   : > { %3878 = vmatpush3.bf16.msra.mxu0 %v1687_v13  ;;  %3879 = vmatprep.mubr.msk.bf16.mxu0 %vm4296_vm4, %v4295_v54 }
 0x40c   : > { %3889 = vmatprep.subr.bf16.mxu0 %v4295_v54 }
 0x40e   : > { %3862 = vmatmul.mubr.msk.bf16.vlgmr.msra.gmra.mrb[36].mxu1 %vm657_vm5, %v4503_v44 }
 0x40f   : > { %3872 = vmatpush3.bf16.msra.mxu1 %v1639_v15  ;;  %3873 = vmatprep.mubr.msk.bf16.mxu1 %vm4296_vm4, %v4295_v54 }
 0x410   : > { %3883 = vmatprep.subr.bf16.mxu1 %v4295_v54 }
 0x448   : > { %v4617_v16 = vpop.f32.mrb[4].mxu1 }
 0x449   : > { %v3779_v17 = vpop.f32.mrb[5].mxu1  ;;  %v1440_v18 = vsel %vm1439_vm7, %v4617_v16, -inf }
 0x44a   : > { %1441 = vmax.xlane.f32.xlu0 %v1440_v18  ;;  %v701_v19 = vpop.f32.mrb[6].mxu1 }
 0x44b   : > { %v3780_v20 = vpop.f32.mrb[7].mxu1 }
 0x4a9   : > { %v4621_v21 = vpop.f32.mrb[8].mxu1 }
 0x4aa   : > { %v3785_v22 = vpop.f32.mrb[9].mxu1  ;;  %v1443_v23 = vsel %vm1439_vm7, %v4621_v21, -inf }
 0x4ab   : > { %1444 = vmax.xlane.f32.xlu1 %v1443_v23  ;;  %v750_v24 = vpop.f32.mrb[10].mxu1 }
 0x4ac   : > { %v3786_v25 = vpop.f32.mrb[11].mxu1  ;;  %v4661_v24 = vpop.permute.xlu0 %1729 }
 0x4ad   : > { %v4625_v26 = vpop.f32.mrb[0].mxu0 }
 0x4ae   : > { %v3797_v29 = vpop.f32.mrb[1].mxu0  ;;  %v1449_v30 = vsel %vm1439_vm7, %v4625_v26, -inf }
 0x4af   : > { %v848_v33 = vpop.f32.mrb[2].mxu0  ;;  %1450 = vmax.xlane.f32.xlu0 %v1449_v30 }
 0x4b0   : > { %v3798_v34 = vpop.f32.mrb[3].mxu0 }
 0x4b1   : > { %v4629_v36 = vpop.f32.mrb[12].mxu1 }
 0x4b2   : > { %v3791_v38 = vpop.f32.mrb[13].mxu1  ;;  %v1446_v41 = vsel %vm1439_vm7, %v4629_v36, -inf }
 0x4b3   : > { %1447 = vmax.xlane.f32.xlu0 %v1446_v41  ;;  %v799_v42 = vpop.f32.mrb[14].mxu1  ;;  %v4669_v41 = vpop.permute.xlu0 %1825 }
 0x4b4   : > { %v3792_v45 = vpop.f32.mrb[15].mxu1 }
 0x4b5   : > { %v4633_v46 = vpop.f32.mrb[4].mxu0 }
 0x4b6   : > { %v3809_v47 = vpop.f32.mrb[5].mxu0  ;;  %v1455_v48 = vsel %vm1439_vm7, %v4633_v46, -inf }
 0x4b7   : > { %v946_v49 = vpop.f32.mrb[6].mxu0  ;;  %1456 = vmax.xlane.f32.xlu1 %v1455_v48 }
 0x4b8   : > { %v3810_v50 = vpop.f32.mrb[7].mxu0 }
 0x4b9   : > { %v4637_v51 = vpop.f32.mrb[16].mxu1 }
 0x4ba   : > { %v3803_v52 = vpop.f32.mrb[17].mxu1  ;;  %v1452_v53 = vsel %vm1439_vm7, %v4637_v51, -inf }
 0x4bb   : > { %1453 = vmax.xlane.f32.xlu0 %v1452_v53  ;;  %v897_v55 = vpop.f32.mrb[18].mxu1  ;;  %v4675_v52 = vpop.permute.xlu0 %1873 }
 0x4bc   : > { %v3804_v56 = vpop.f32.mrb[19].mxu1 }
 0x4bd   : > { %v4641_v57 = vpop.f32.mrb[8].mxu0 }
 0x4be   : > { %v3821_v58 = vpop.f32.mrb[9].mxu0  ;;  %v1461_v59 = vsel %vm1439_vm7, %v4641_v57, -inf }
 0x4bf   : > { %v1044_v60 = vpop.f32.mrb[10].mxu0  ;;  %1462 = vmax.xlane.f32.xlu1 %v1461_v59 }
 0x4c0   : > { %v3822_v61 = vpop.f32.mrb[11].mxu0 }
 0x4c1   : > { %v4645_v62 = vpop.f32.mrb[20].mxu1 }
 0x4c2   : > { %v3815_v63 = vpop.f32.mrb[21].mxu1  ;;  %v1458_v0 = vsel %vm1439_vm7, %v4645_v62, -inf }
 0x4c3   : > { %1459 = vmax.xlane.f32.xlu0 %v1458_v0  ;;  %v995_v1 = vpop.f32.mrb[22].mxu1 }
 0x4c4   : > { %v3816_v2 = vpop.f32.mrb[23].mxu1 }
 0x4c5   : > { %v4649_v3 = vpop.f32.mrb[12].mxu0 }
 0x4c6   : > { %v3833_v4 = vpop.f32.mrb[13].mxu0  ;;  %v1467_v5 = vsel %vm1439_vm7, %v4649_v3, -inf }
 0x4c7   : > { %v1142_v6 = vpop.f32.mrb[14].mxu0  ;;  %1468 = vmax.xlane.f32.xlu1 %v1467_v5  ;;  %v4696_v4 = vpop.permute.xlu1 %1777 }
 0x4c8   : > { %v3834_v7 = vpop.f32.mrb[15].mxu0 }
 0x4c9   : > { %v4653_v8 = vpop.f32.mrb[24].mxu1 }
 0x4ca   : > { %v3827_v9 = vpop.f32.mrb[25].mxu1  ;;  %v1464_v58 = vsel %vm1439_vm7, %v4653_v8, -inf }
 0x4cb   : > { %v1093_v10 = vpop.f32.mrb[26].mxu1 }
 0x4cc   : > { %v3828_v11 = vpop.f32.mrb[27].mxu1 }
 0x4cd   : > { %v4655_v12 = vpop.f32.mrb[16].mxu0 }
 0x4ce   : > { %v3845_v13 = vpop.f32.mrb[17].mxu0  ;;  %v1473_v59 = vsel %vm1439_vm7, %v4655_v12, -inf }
 0x4cf   : > { %v1240_v14 = vpop.f32.mrb[18].mxu0 }
 0x4d0   : > { %v3846_v15 = vpop.f32.mrb[19].mxu0 }
 0x4d1   : > { %v4657_v17 = vpop.f32.mrb[28].mxu1 }
 0x4d2   : > { %v3839_v18 = vpop.f32.mrb[29].mxu1  ;;  %v1470_v60 = vsel %vm1439_vm7, %v4657_v17, -inf }
 0x4d3   : > { %v1191_v19 = vpop.f32.mrb[30].mxu1 }
 0x4d4   : > { %v3840_v20 = vpop.f32.mrb[31].mxu1 }
 0x4d5   : > { %v4659_v22 = vpop.f32.mrb[20].mxu0 }
 0x4d6   : > { %v3857_v23 = vpop.f32.mrb[21].mxu0  ;;  %v1479_v63 = vsel %vm1439_vm7, %v4659_v22, -inf }
 0x4d7   : > { %v1338_v25 = vpop.f32.mrb[22].mxu0 }
 0x4d8   : > { %v3858_v29 = vpop.f32.mrb[23].mxu0  ;;  %1921 = vrot.lane.b32.xlu1 %v4469_v28, %s4305_s17 }
 0x4d9   : > { %1969 = vrot.lane.b32.xlu0 %v4467_v27, %s4305_s17  ;;  %v4667_v30 = vpop.f32.mrb[32].mxu1  ;;  %v1442_v27 = vpop.xlane.xlu0 %1441 }
 0x4da   : > { %v3851_v33 = vpop.f32.mrb[33].mxu1  ;;  %v1488_v55 = vsub.f32 %v4617_v16, %v1442_v27  ;;  %v1476_v1 = vsel %vm1439_vm7, %v4667_v30, -inf }
 0x4db   : > { %v1289_v34 = vpop.f32.mrb[34].mxu1 }
 0x4dc   : > { %v3852_v38 = vpop.f32.mrb[35].mxu1  ;;  %v1504_v56 = vmul.f32 1.442695, %v1488_v55 }
 0x4dd   : > { %v4671_v42 = vpop.f32.mrb[24].mxu0 }
 0x4de   : > { %v3869_v45 = vpop.f32.mrb[25].mxu0  ;;  %4167 = vpow2.f32 %v1504_v56  ;;  %v1485_v0 = vsel %vm1439_vm7, %v4671_v42, -inf }
 0x4df   : > { %v1436_v47 = vpop.f32.mrb[26].mxu0 }
 0x4e0   : > { %v3870_v48 = vpop.f32.mrb[27].mxu0 }
 0x4e1   : > { %v4673_v49 = vpop.f32.mrb[36].mxu1 }
 0x4e2   : > { %v3863_v50 = vpop.f32.mrb[37].mxu1  ;;  %v1482_v2 = vsel %vm1439_vm7, %v4673_v49, -inf }
 0x4e3   : > { %v1387_v28 = vpop.f32.mrb[38].mxu1 }
 0x4e4   : > { %v3864_v53 = vpop.f32.mrb[39].mxu1 }
 0x4e8   : > { %v4684_v61 = vpop.eup %4167 }
 0x4e9   : > { %v1536_v16 = vsel %vm1439_vm7, %v4684_v61, 0.0 }
 0x4f8   : > { %1465 = vmax.xlane.f32.xlu0 %v1464_v58 }
 0x4fc   : > { %1474 = vmax.xlane.f32.xlu1 %v1473_v59  ;;  %1471 = vmax.xlane.f32.xlu0 %v1470_v60 }
 0x500   : > { %1480 = vmax.xlane.f32.xlu1 %v1479_v63  ;;  %1537 = vadd.xlane.f32.xlu0 %v1536_v16 }
 0x504   : > { %1486 = vmax.xlane.f32.xlu1 %v1485_v0  ;;  %1477 = vmax.xlane.f32.xlu0 %v1476_v1 }
 0x508   : > { %1483 = vmax.xlane.f32.xlu0 %v1482_v2 }
 0x538   : > { %v1445_v5 = vpop.xlane.xlu1 %1444 }
 0x539   : > { %v1489_v6 = vsub.f32 %v4621_v21, %v1445_v5 }
 0x53b   : > { %v1506_v7 = vmul.f32 1.442695, %v1489_v6 }
 0x53c   : > { %v1451_v9 = vpop.xlane.xlu0 %1450 }
 0x53d   : > { %4169 = vpow2.f32 %v1506_v7  ;;  %v1491_v10 = vsub.f32 %v4625_v26, %v1451_v9 }
 0x53f   : > { %v1510_v11 = vmul.f32 1.442695, %v1491_v10 }
 0x540   : > { %v1448_v13 = vpop.xlane.xlu0 %1447 }
 0x541   : > { %4171 = vpow2.f32 %v1510_v11  ;;  %v1490_v14 = vsub.f32 %v4629_v36, %v1448_v13 }
 0x543   : > { %v1508_v15 = vmul.f32 1.442695, %v1490_v14 }
 0x544   : > { %v1457_v18 = vpop.xlane.xlu1 %1456 }
 0x545   : > { %4173 = vpow2.f32 %v1508_v15  ;;  %v1493_v19 = vsub.f32 %v4633_v46, %v1457_v18 }
 0x547   : > { %v4702_v20 = vpop.eup %4169  ;;  %v1514_v23 = vmul.f32 1.442695, %v1493_v19 }
 0x548   : > { %v1539_v21 = vsel %vm1439_vm7, %v4702_v20, 0.0  ;;  %v1454_v34 = vpop.xlane.xlu0 %1453 }
 0x549   : > { %4175 = vpow2.f32 %v1514_v23  ;;  %1540 = vadd.xlane.f32.xlu1 %v1539_v21  ;;  %v1492_v47 = vsub.f32 %v4637_v51, %v1454_v34 }
 0x54b   : > { %v4706_v25 = vpop.eup %4171  ;;  %v1512_v50 = vmul.f32 1.442695, %v1492_v47 }
 0x54c   : > { %v1545_v26 = vsel %vm1439_vm7, %v4706_v25, 0.0  ;;  %v1463_v38 = vpop.xlane.xlu1 %1462 }
 0x54d   : > { %1546 = vadd.xlane.f32.xlu1 %v1545_v26  ;;  %4177 = vpow2.f32 %v1512_v50 }
 0x54f   : > { %v4710_v36 = vpop.eup %4173 }
 0x550   : > { %v1542_v29 = vsel %vm1439_vm7, %v4710_v36, 0.0  ;;  %v1460_v45 = vpop.xlane.xlu0 %1459 }
 0x551   : > { %1543 = vadd.xlane.f32.xlu0 %v1542_v29 }
 0x553   : > { %v4714_v46 = vpop.eup %4175 }
 0x554   : > { %v1551_v33 = vsel %vm1439_vm7, %v4714_v46, 0.0  ;;  %v1469_v48 = vpop.xlane.xlu1 %1468  ;;  %v4730_v28 = vpop.permute.xlu0 %1969 }
 0x555   : > { %1552 = vadd.xlane.f32.xlu1 %v1551_v33  ;;  %v1497_v27 = vsub.f32 %v4649_v3, %v1469_v48 }
 0x557   : > { %v1522_v59 = vmul.f32 1.442695, %v1497_v27  ;;  %v4739_v0 = vpop.eup %4177 }
 0x558   : > { %v4733_v53 = vpop.permute.xlu1 %1921 }
 0x566   : > { %2017 = vrot.lane.b32.xlu1 %v4477_v32, %s4305_s17  ;;  %v1495_v32 = vsub.f32 %v4641_v57, %v1463_v38  ;;  %v1735_v38 = vsel %vm1637_vm6, %v4661_v24, 0 }
 0x567   : > { %2065 = vrot.lane.b32.xlu0 %v4475_v31, %s4305_s17 }
 0x568   : > { %v1518_v31 = vmul.f32 1.442695, %v1495_v32 }
 0x56a   : > { %4179 = vpow2.f32 %v1518_v31 }
 0x56b   : > { %2113 = vrot.lane.b32.xlu0 %v4483_v35, %s4305_s17  ;;  %v1494_v35 = vsub.f32 %v4645_v62, %v1460_v45 }
 0x56d   : > { %v1516_v55 = vmul.f32 1.442695, %v1494_v35 }
 0x56f   : > { %2161 = vrot.lane.b32.xlu0 %v4486_v37, %s4305_s17 }
 0x573   : > { %2209 = vrot.lane.b32.xlu0 %v4493_v39, %s4305_s17 }
 0x574   : > { %v4744_v6 = vpop.eup %4179 }
 0x575   : > { %v1557_v13 = vsel %vm1439_vm7, %v4744_v6, 0.0 }
 0x585   : > { %v1466_v37 = vpop.xlane.xlu0 %1465 }
 0x586   : > { %v1496_v39 = vsub.f32 %v4653_v8, %v1466_v37 }
 0x588   : > { %v1520_v51 = vmul.f32 1.442695, %v1496_v39 }
 0x589   : > { %v1475_v56 = vpop.xlane.xlu1 %1474  ;;  %v1472_v58 = vpop.xlane.xlu0 %1471 }
 0x58a   : > { %4181 = vpow2.f32 %v1520_v51  ;;  %v1499_v57 = vsub.f32 %v4655_v12, %v1475_v56  ;;  %v1498_v62 = vsub.f32 %v4657_v17, %v1472_v58  ;;  %v1548_v12 = vsel %vm1439_vm7, %v4739_v0, 0.0 }
 0x58b   : > { %4183 = vpow2.f32 %v1516_v55  ;;  %v1783_v58 = vsel %vm1637_vm6, %v4696_v4, 0  ;;  %v1879_v4 = vsel %vm1637_vm6, %v4675_v52, 0  ;;  %v1975_v52 = vsel %vm1637_vm6, %v4730_v28, 0 }
 0x58c   : > { %v1526_v60 = vmul.f32 1.442695, %v1499_v57  ;;  %v1524_v8 = vmul.f32 1.442695, %v1498_v62 }
 0x58d   : > { %v1481_v63 = vpop.xlane.xlu1 %1480  ;;  %v1538_v16 = vpop.xlane.xlu0 %1537 }
 0x58e   : > { %4185 = vpow2.f32 %v1526_v60  ;;  %v1501_v3 = vsub.f32 %v4659_v22, %v1481_v63 }
 0x58f   : > { %4187 = vpow2.f32 %v1522_v59 }
 0x590   : > { %v1530_v1 = vmul.f32 1.442695, %v1501_v3  ;;  %4189 = vrcp.f32 %v1538_v16  ;;  %v1831_v16 = vsel %vm1637_vm6, %v4669_v41, 0 }
 0x591   : > { %v1487_v2 = vpop.xlane.xlu1 %1486  ;;  %v1478_v5 = vpop.xlane.xlu0 %1477 }
 0x592   : > { %4191 = vpow2.f32 %v1530_v1  ;;  %v1503_v17 = vsub.f32 %v4671_v42, %v1487_v2  ;;  %v1500_v7 = vsub.f32 %v4667_v30, %v1478_v5  ;;  %1549 = vadd.xlane.f32.xlu0 %v1548_v12 }
 0x593   : > { %4193 = vpow2.f32 %v1524_v8 }
 0x594   : > { %v4748_v9 = vpop.eup %4181  ;;  %v1534_v22 = vmul.f32 1.442695, %v1503_v17  ;;  %v1528_v10 = vmul.f32 1.442695, %v1500_v7 }
 0x595   : > { %v1560_v11 = vsel %vm1439_vm7, %v4748_v9, 0.0  ;;  %v4754_v14 = vpop.eup %4183  ;;  %v1484_v50 = vpop.xlane.xlu0 %1483 }
 0x596   : > { %4195 = vpow2.f32 %v1534_v22  ;;  %1561 = vadd.xlane.f32.xlu1 %v1560_v11  ;;  %1558 = vadd.xlane.f32.xlu0 %v1557_v13  ;;  %v1554_v18 = vsel %vm1439_vm7, %v4754_v14, 0.0  ;;  %v1502_v32 = vsub.f32 %v4673_v49, %v1484_v50  ;;  %v1927_v13 = vsel %vm1637_vm6, %v4733_v53, 0 }
 0x597   : > { %4197 = vpow2.f32 %v1528_v10 }
 0x598   : > { %v4756_v42 = vpop.eup %4185  ;;  %v1532_v31 = vmul.f32 1.442695, %v1502_v32 }
 0x599   : > { %v4758_v30 = vpop.eup %4187  ;;  %v1569_v15 = vsel %vm1439_vm7, %v4756_v42, 0.0 }
 0x59a   : > { %v4190_v19 = vpop.eup %4189  ;;  %1570 = vadd.xlane.f32.xlu1 %v1569_v15  ;;  %1555 = vadd.xlane.f32.xlu0 %v1554_v18  ;;  %v1563_v33 = vsel %vm1439_vm7, %v4758_v30, 0.0  ;;  %4199 = vpow2.f32 %v1532_v31 }
 0x59b   : > { %v1600_v23 = vmul.f32 %v4190_v19, %v4684_v61 }
 0x59c   : > { %v4765_v21 = vpop.eup %4191 }
 0x59d   : > { %v1616_v26 = vpack.c.bf16 %v1600_v23, %v1600_v23  ;;  %v1575_v29 = vsel %vm1439_vm7, %v4765_v21, 0.0  ;;  %v4771_v34 = vpop.eup %4193 }
 0x59e   : > { %1576 = vadd.xlane.f32.xlu1 %v1575_v29  ;;  %1564 = vadd.xlane.f32.xlu0 %v1563_v33  ;;  %v1566_v47 = vsel %vm1439_vm7, %v4771_v34, 0.0 }
 0x59f   : > { %3874 = vmatmul.mubr.msk.bf16.vlgmr.msra.gmra.mrb[40].mxu1 %vm1439_vm7, %v1616_v26 }
 0x5a0   : > { %v4776_v45 = vpop.eup %4195  ;;  %3884 = vmatpush3.bf16.msra.mxu1 %v1735_v38  ;;  %3885 = vmatprep.mubr.msk.bf16.mxu1 %vm4296_vm4, %v4295_v54 }
 0x5a1   : > { %v1581_v61 = vsel %vm1439_vm7, %v4776_v45, 0.0  ;;  %3895 = vmatprep.subr.bf16.mxu1 %v4295_v54  ;;  %v4785_v48 = vpop.eup %4197 }
 0x5a2   : > { %1582 = vadd.xlane.f32.xlu1 %v1581_v61  ;;  %1567 = vadd.xlane.f32.xlu0 %v1566_v47  ;;  %v1572_v24 = vsel %vm1439_vm7, %v4785_v48, 0.0 }
 0x5a4   : > { %v4794_v37 = vpop.eup %4199 }
 0x5a5   : > { %v1578_v27 = vsel %vm1439_vm7, %v4794_v37, 0.0 }
 0x5a6   : > { %1573 = vadd.xlane.f32.xlu0 %v1572_v24 }
 0x5b3   : > { %2257 = vrot.lane.b32.xlu1 %v4495_v40, %s4305_s17 }
 0x5bc   : > { %2305 = vrot.lane.b32.xlu0 %v4503_v44, %s4305_s17 }
 0x5d6   : > { %v1541_v35 = vpop.xlane.xlu1 %1540 }
 0x5d7   : > { %4201 = vrcp.f32 %v1541_v35 }
 0x5da   : > { %v1547_v39 = vpop.xlane.xlu1 %1546 }
 0x5db   : > { %4203 = vrcp.f32 %v1547_v39  ;;  %1579 = vadd.xlane.f32.xlu0 %v1578_v27 }
 0x5de   : > { %v1544_v55 = vpop.xlane.xlu0 %1543 }
 0x5df   : > { %4205 = vrcp.f32 %v1544_v55 }
 0x5e1   : > { %v4202_v40 = vpop.eup %4201 }
 0x5e2   : > { %v1601_v44 = vmul.f32 %v4202_v40, %v4702_v20  ;;  %v1553_v51 = vpop.xlane.xlu1 %1552 }
 0x5e3   : > { %4207 = vrcp.f32 %v1553_v51 }
 0x5e4   : > { %v1617_v49 = vpack.c.bf16 %v1601_v44, %v1601_v44 }
 0x5e5   : > { %v4204_v56 = vpop.eup %4203 }
 0x5e6   : > { %3880 = vmatmul.mubr.msk.bf16.vlgmr.msra.gmra.mrb[28].mxu0 %vm1439_vm7, %v1617_v49  ;;  %v1603_v57 = vmul.f32 %v4204_v56, %v4706_v25  ;;  %v2018_v2 = vpop.permute.xlu1 %2017 }
 0x5e7   : > { %3890 = vmatpush3.bf16.msra.mxu0 %v1783_v58  ;;  %3891 = vmatprep.mubr.msk.bf16.mxu0 %vm4296_vm4, %v4295_v54  ;;  %v2023_v38 = vsel %vm1637_vm6, %v2018_v2, 0 }
 0x5e8   : > { %3901 = vmatprep.subr.bf16.mxu0 %v4295_v54  ;;  %v1619_v62 = vpack.c.bf16 %v1603_v57, %v1603_v57 }
 0x5e9   : > { %v4206_v59 = vpop.eup %4205 }
 0x5ea   : > { %v1602_v20 = vmul.f32 %v4206_v59, %v4710_v36  ;;  %v2066_v36 = vpop.permute.xlu0 %2065 }
 0x5eb   : > { %v2071_v23 = vsel %vm1637_vm6, %v2066_v36, 0 }
 0x5ec   : > { %v1618_v60 = vpack.c.bf16 %v1602_v20, %v1602_v20 }
 0x5ed   : > { %v4208_v63 = vpop.eup %4207 }
 0x5ee   : > { %3886 = vmatmul.mubr.msk.bf16.vlgmr.msra.gmra.mrb[44].mxu1 %vm1439_vm7, %v1618_v60  ;;  %3892 = vmatmul.mubr.msk.bf16.vlgmr.msra.gmra.mrb[32].mxu0 %vm1439_vm7, %v1619_v62  ;;  %v1605_v25 = vmul.f32 %v4208_v63, %v4714_v46  ;;  %v2114_v46 = vpop.permute.xlu0 %2113 }
 0x5ef   : > { %3896 = vmatpush3.bf16.msra.mxu1 %v1831_v16  ;;  %3902 = vmatpush3.bf16.msra.mxu0 %v1879_v4  ;;  %v2119_v39 = vsel %vm1637_vm6, %v2114_v46, 0  ;;  %v2402_v16 = vld [vmem:[%s4389_s18 + $0x2] sm:$0x3]  ;;  %v2401_v46 = vld [vmem:[%s4389_s18] sm:$0x3] }
 0x5f0   : > { %3903 = vmatprep.mubr.msk.bf16.mxu0 %vm4296_vm4, %v4295_v54  ;;  %3913 = vmatprep.subr.bf16.mxu0 %v4295_v54  ;;  %v1621_v41 = vpack.c.bf16 %v1605_v25, %v1605_v25  ;;  %v4899_v2 = vsel %vm2420_vm8, %v2401_v46, 0 }
 0x5f1   : > { %2353 = vrot.lane.b32.xlu0 %v4501_v43, %s4305_s17  ;;  %3897 = vmatprep.mubr.msk.bf16.mxu1 %vm4296_vm4, %v4295_v54 }
 0x5f2   : > { %3907 = vmatprep.subr.bf16.mxu1 %v4295_v54  ;;  %v2162_v43 = vpop.permute.xlu0 %2161 }
 0x5f3   : > { %v2167_v31 = vsel %vm1637_vm6, %v2162_v43, 0 }
 0x5f6   : > { %3904 = vmatmul.mubr.msk.bf16.vlgmr.msra.gmra.mrb[36].mxu0 %vm1439_vm7, %v1621_v41  ;;  %v4828_v3 = vpop.permute.xlu0 %2209  ;;  %v4889_v41 = vsel %vm2420_vm8, %v2402_v16, 0 }
 0x5f7   : > { %3914 = vmatpush3.bf16.msra.mxu0 %v1975_v52  ;;  %3915 = vmatprep.mubr.msk.bf16.mxu0 %vm4296_vm4, %v4295_v54 }
 0x5f8   : > { %3925 = vmatprep.subr.bf16.mxu0 %v4295_v54 }
 0x61f   : > { %v1550_v8 = vpop.xlane.xlu0 %1549 }
 0x620   : > { %4209 = vrcp.f32 %v1550_v8 }
 0x623   : > { %v1559_v1 = vpop.xlane.xlu0 %1558  ;;  %v1562_v28 = vpop.xlane.xlu1 %1561 }
 0x624   : > { %4211 = vrcp.f32 %v1559_v1 }
 0x627   : > { %v1556_v5 = vpop.xlane.xlu0 %1555  ;;  %v1571_v10 = vpop.xlane.xlu1 %1570 }
 0x628   : > { %4213 = vrcp.f32 %v1556_v5  ;;  %v2403_v5 = vld [vmem:[%s4389_s18 + $0x4] sm:$0x3] }
 0x629   : > { %4215 = vrcp.f32 %v1562_v28 }
 0x62a   : > { %v4210_v12 = vpop.eup %4209 }
 0x62b   : > { %v1604_v17 = vmul.f32 %v4210_v12, %v4739_v0  ;;  %v1565_v7 = vpop.xlane.xlu0 %1564  ;;  %v1577_v53 = vpop.xlane.xlu1 %1576  ;;  %v2404_v12 = vld [vmem:[%s4389_s18 + $0x6] sm:$0x3] }
 0x62c   : > { %4217 = vrcp.f32 %v1565_v7 }
 0x62d   : > { %v1620_v22 = vpack.c.bf16 %v1604_v17, %v1604_v17  ;;  %4219 = vrcp.f32 %v1571_v10  ;;  %v4917_v10 = vsel %vm2420_vm8, %v2404_v12, 0 }
 0x62e   : > { %v4212_v11 = vpop.eup %4211 }
 0x62f   : > { %3898 = vmatmul.mubr.msk.bf16.vlgmr.msra.gmra.mrb[48].mxu1 %vm1439_vm7, %v1620_v22  ;;  %v1607_v15 = vmul.f32 %v4212_v11, %v4744_v6  ;;  %v1568_v0 = vpop.xlane.xlu0 %1567  ;;  %v1583_v32 = vpop.xlane.xlu1 %1582 }
 0x630   : > { %3908 = vmatpush3.bf16.msra.mxu1 %v1927_v13  ;;  %3909 = vmatprep.mubr.msk.bf16.mxu1 %vm4296_vm4, %v4295_v54  ;;  %4221 = vrcp.f32 %v1568_v0  ;;  %v2405_v0 = vld [vmem:[%s4389_s18 + $0x8] sm:$0x3] }
 0x631   : > { %3919 = vmatprep.subr.bf16.mxu1 %v4295_v54  ;;  %v1623_v18 = vpack.c.bf16 %v1607_v15, %v1607_v15  ;;  %4223 = vrcp.f32 %v1577_v53  ;;  %v2406_v15 = vld [vmem:[%s4389_s18 + $0xa] sm:$0x3] }
 0x632   : > { %v4214_v19 = vpop.eup %4213 }
 0x633   : > { %v1606_v26 = vmul.f32 %v4214_v19, %v4754_v14  ;;  %3916 = vmatmul.mubr.msk.bf16.vlgmr.msra.gmra.mrb[40].mxu0 %vm1439_vm7, %v1623_v18  ;;  %v4216_v6 = vpop.eup %4215  ;;  %v1574_v47 = vpop.xlane.xlu0 %1573 }
 0x634   : > { %3926 = vmatpush3.bf16.msra.mxu0 %v2071_v23  ;;  %3927 = vmatprep.mubr.msk.bf16.mxu0 %vm4296_vm4, %v4295_v54  ;;  %v1608_v14 = vmul.f32 %v4216_v6, %v4748_v9  ;;  %4225 = vrcp.f32 %v1574_v47  ;;  %v2258_v27 = vpop.permute.xlu1 %2257 }
 0x635   : > { %v1622_v29 = vpack.c.bf16 %v1606_v26, %v1606_v26  ;;  %3937 = vmatprep.subr.bf16.mxu0 %v4295_v54  ;;  %4227 = vrcp.f32 %v1583_v32 }
 0x636   : > { %v4218_v33 = vpop.eup %4217  ;;  %v1624_v35 = vpack.c.bf16 %v1608_v14, %v1608_v14 }
 0x637   : > { %v1609_v61 = vmul.f32 %v4218_v33, %v4758_v30  ;;  %3910 = vmatmul.mubr.msk.bf16.vlgmr.msra.gmra.mrb[52].mxu1 %vm1439_vm7, %v1622_v29  ;;  %v4220_v50 = vpop.eup %4219  ;;  %v4927_v29 = vsel %vm2420_vm8, %v2406_v15, 0 }
 0x638   : > { %3920 = vmatpush3.bf16.msra.mxu1 %v2023_v38  ;;  %3921 = vmatprep.mubr.msk.bf16.mxu1 %vm4296_vm4, %v4295_v54  ;;  %v1611_v30 = vmul.f32 %v4220_v50, %v4756_v42  ;;  %v2263_v42 = vsel %vm1637_vm6, %v2258_v27, 0 }
 0x639   : > { %v1625_v24 = vpack.c.bf16 %v1609_v61, %v1609_v61  ;;  %3931 = vmatprep.subr.bf16.mxu1 %v4295_v54  ;;  %v4930_v61 = vsel %vm2420_vm8, %v2405_v0, 0 }
 0x63a   : > { %v4222_v9 = vpop.eup %4221  ;;  %v1627_v40 = vpack.c.bf16 %v1611_v30, %v1611_v30 }
 0x63b   : > { %3928 = vmatmul.mubr.msk.bf16.vlgmr.msra.gmra.mrb[44].mxu0 %vm1439_vm7, %v1625_v24  ;;  %v1610_v55 = vmul.f32 %v4222_v9, %v4771_v34  ;;  %v4224_v44 = vpop.eup %4223  ;;  %v2215_v34 = vsel %vm1637_vm6, %v4828_v3, 0  ;;  %v2408_v24 = vld [vmem:[%s4389_s18 + $0xe] sm:$0x3] }
 0x63c   : > { %3938 = vmatpush3.bf16.msra.mxu0 %v2167_v31  ;;  %3939 = vmatprep.mubr.msk.bf16.mxu0 %vm4296_vm4, %v4295_v54  ;;  %v1613_v51 = vmul.f32 %v4224_v44, %v4765_v21  ;;  %v2306_v21 = vpop.permute.xlu0 %2305  ;;  %v4944_v30 = vsel %vm2420_vm8, %v2408_v24, 0 }
 0x63d   : > { %3949 = vmatprep.subr.bf16.mxu0 %v4295_v54  ;;  %v1626_v49 = vpack.c.bf16 %v1610_v55, %v1610_v55  ;;  %v2311_v20 = vsel %vm1637_vm6, %v2306_v21, 0 }
 0x63e   : > { %v4226_v56 = vpop.eup %4225  ;;  %v1629_v57 = vpack.c.bf16 %v1613_v51, %v1613_v51 }
 0x63f   : > { %3922 = vmatmul.mubr.msk.bf16.vlgmr.msra.gmra.mrb[56].mxu1 %vm1439_vm7, %v1624_v35  ;;  %v1612_v58 = vmul.f32 %v4226_v56, %v4785_v48  ;;  %v4228_v48 = vpop.eup %4227 }
 0x640   : > { %3932 = vmatpush3.bf16.msra.mxu1 %v2119_v39  ;;  %3933 = vmatprep.mubr.msk.bf16.mxu1 %vm4296_vm4, %v4295_v54  ;;  %v1615_v62 = vmul.f32 %v4228_v48, %v4776_v45  ;;  %v2407_v39 = vld [vmem:[%s4389_s18 + $0xc] sm:$0x3] }
 0x641   : > { %3943 = vmatprep.subr.bf16.mxu1 %v4295_v54  ;;  %v1628_v59 = vpack.c.bf16 %v1612_v58, %v1612_v58  ;;  %v4953_v44 = vsel %vm2420_vm8, %v2407_v39, 0 }
 0x642   : > { %v1631_v25 = vpack.c.bf16 %v1615_v62, %v1615_v62 }
 0x643   : > { %3940 = vmatmul.mubr.msk.bf16.vlgmr.msra.gmra.mrb[48].mxu0 %vm1439_vm7, %v1627_v40 }
 0x644   : > { %3950 = vmatpush3.bf16.msra.mxu0 %v2263_v42  ;;  %3951 = vmatprep.mubr.msk.bf16.mxu0 %vm4296_vm4, %v4295_v54 }
 0x645   : > { %3961 = vmatprep.subr.bf16.mxu0 %v4295_v54 }
 0x647   : > { %3934 = vmatmul.mubr.msk.bf16.vlgmr.msra.gmra.mrb[60].mxu1 %vm1439_vm7, %v1626_v49 }
 0x648   : > { %3944 = vmatpush3.bf16.msra.mxu1 %v2215_v34  ;;  %3945 = vmatprep.mubr.msk.bf16.mxu1 %vm4296_vm4, %v4295_v54 }
 0x649   : > { %3955 = vmatprep.subr.bf16.mxu1 %v4295_v54 }
 0x64b   : > { %3952 = vmatmul.mubr.msk.bf16.vlgmr.msra.gmra.mrb[52].mxu0 %vm1439_vm7, %v1629_v57 }
 0x64c   : > { %3963 = vmatprep.mubr.msk.bf16.mxu0 %vm4296_vm4, %v4295_v54 }
 0x64f   : > { %3946 = vmatmul.mubr.msk.bf16.vlgmr.msra.gmra.mrb[64].mxu1 %vm1439_vm7, %v1628_v59 }
 0x650   : > { %3956 = vmatpush3.bf16.msra.mxu1 %v2311_v20  ;;  %3957 = vmatprep.mubr.msk.bf16.mxu1 %vm4296_vm4, %v4295_v54 }
 0x651   : > { %3967 = vmatprep.subr.bf16.mxu1 %v4295_v54 }
 0x668   : > { %v1580_v60 = vpop.xlane.xlu0 %1579 }
 0x669   : > { %4229 = vrcp.f32 %v1580_v60 }
 0x66c   : > { %v2354_v63 = vpop.permute.xlu0 %2353 }
 0x66d   : > { %v2359_v4 = vsel %vm1637_vm6, %v2354_v63, 0 }
 0x66e   : > { %3962 = vmatpush3.bf16.msra.mxu0 %v2359_v4 }
 0x66f   : > { %3973 = vmatprep.subr.bf16.mxu0 %v4295_v54 }
 0x671   : > { %3964 = vmatmul.mubr.msk.bf16.vlgmr.msra.gmra.mrb[56].mxu0 %vm1439_vm7, %v1631_v25 }
 0x672   : > { %v1675_v52 = vpop.f32.mrb[40].mxu1  ;;  %3974 = vmatpush3.bf16.msra.mxu0 %v4889_v41  ;;  %3975 = vmatprep.mubr.msk.bf16.mxu0 %vm4296_vm4, %v4295_v54 }
 0x673   : > { %v4230_v45 = vpop.eup %4229  ;;  %v3875_v36 = vpop.f32.mrb[41].mxu1  ;;  %3985 = vmatprep.subr.bf16.mxu0 %v4295_v54  ;;  %v2409_v28 = vpack.c.bf16 %v1675_v52, %v1675_v52 }
 0x674   : > { %v1614_v43 = vmul.f32 %v4230_v45, %v4794_v37  ;;  %v1678_v3 = vpop.f32.mrb[42].mxu1  ;;  %v4908_v37 = vsel %vm2420_vm8, %v2403_v5, 0 }
 0x675   : > { %v3876_v8 = vpop.f32.mrb[43].mxu1 }
 0x676   : > { %v1630_v1 = vpack.c.bf16 %v1614_v43, %v1614_v43 }
 0x678   : > { %3958 = vmatmul.mubr.msk.bf16.vlgmr.msra.gmra.mrb[68].mxu1 %vm1439_vm7, %v1630_v1 }
 0x679   : > { %3968 = vmatpush3.bf16.msra.mxu1 %v4899_v2  ;;  %3969 = vmatprep.mubr.msk.bf16.mxu1 %vm4296_vm4, %v4295_v54 }
 0x67a   : > { %3979 = vmatprep.subr.bf16.mxu1 %v4295_v54 }
 0x680   : > { %3970 = vmatmul.mubr.msk.bf16.vlgmr.msra.gmra.mrb[72].mxu1 %vm657_vm5, %v2409_v28 }
 0x681   : > { %3980 = vmatpush3.bf16.msra.mxu1 %v4908_v37  ;;  %3981 = vmatprep.mubr.msk.bf16.mxu1 %vm4296_vm4, %v4295_v54 }
 0x682   : > { %3991 = vmatprep.subr.bf16.mxu1 %v4295_v54 }
 0x6b9   : > { %v1723_v17 = vpop.f32.mrb[28].mxu0 }
 0x6ba   : > { %v2410_v7 = vpack.c.bf16 %v1723_v17, %v1723_v17  ;;  %v3881_v22 = vpop.f32.mrb[29].mxu0 }
 0x6bb   : > { %v1726_v11 = vpop.f32.mrb[30].mxu0 }
 0x6bc   : > { %v3882_v13 = vpop.f32.mrb[31].mxu0  ;;  %3976 = vmatmul.mubr.msk.bf16.vlgmr.msra.gmra.mrb[60].mxu0 %vm657_vm5, %v2410_v7 }
 0x6bd   : > { %3986 = vmatpush3.bf16.msra.mxu0 %v4917_v10  ;;  %3987 = vmatprep.mubr.msk.bf16.mxu0 %vm4296_vm4, %v4295_v54 }
 0x6be   : > { %3997 = vmatprep.subr.bf16.mxu0 %v4295_v54 }
 0x6c1   : > { %v1771_v18 = vpop.f32.mrb[44].mxu1  ;;  %v1819_v19 = vpop.f32.mrb[32].mxu0 }
 0x6c2   : > { %v2411_v23 = vpack.c.bf16 %v1771_v18, %v1771_v18  ;;  %v2412_v26 = vpack.c.bf16 %v1819_v19, %v1819_v19  ;;  %v3887_v53 = vpop.f32.mrb[45].mxu1  ;;  %v3893_v6 = vpop.f32.mrb[33].mxu0 }
 0x6c3   : > { %v1774_v33 = vpop.f32.mrb[46].mxu1  ;;  %v1822_v38 = vpop.f32.mrb[34].mxu0 }
 0x6c4   : > { %v3888_v14 = vpop.f32.mrb[47].mxu1  ;;  %v3894_v47 = vpop.f32.mrb[35].mxu0  ;;  %3982 = vmatmul.mubr.msk.bf16.vlgmr.msra.gmra.mrb[76].mxu1 %vm657_vm5, %v2411_v23  ;;  %3988 = vmatmul.mubr.msk.bf16.vlgmr.msra.gmra.mrb[64].mxu0 %vm657_vm5, %v2412_v26 }
 0x6c5   : > { %3998 = vmatpush3.bf16.msra.mxu0 %v4927_v29  ;;  %3999 = vmatprep.mubr.msk.bf16.mxu0 %vm4296_vm4, %v4295_v54 }
 0x6c6   : > { %3992 = vmatpush3.bf16.msra.mxu1 %v4930_v61  ;;  %3993 = vmatprep.mubr.msk.bf16.mxu1 %vm4296_vm4, %v4295_v54 }
 0x6c7   : > { %4009 = vmatprep.subr.bf16.mxu0 %v4295_v54  ;;  %4003 = vmatprep.subr.bf16.mxu1 %v4295_v54 }
 0x6c9   : > { %v1915_v50 = vpop.f32.mrb[36].mxu0 }
 0x6ca   : > { %v2414_v32 = vpack.c.bf16 %v1915_v50, %v1915_v50  ;;  %v3905_v31 = vpop.f32.mrb[37].mxu0 }
 0x6cb   : > { %v1918_v35 = vpop.f32.mrb[38].mxu0 }
 0x6cc   : > { %v3906_v9 = vpop.f32.mrb[39].mxu0  ;;  %4000 = vmatmul.mubr.msk.bf16.vlgmr.msra.gmra.mrb[68].mxu0 %vm657_vm5, %v2414_v32 }
 0x6cd   : > { %4010 = vmatpush3.bf16.msra.mxu0 %v4944_v30  ;;  %4011 = vmatprep.mubr.msk.bf16.mxu0 %vm4296_vm4, %v4295_v54 }
 0x6ce   : > { %4021 = vmatprep.subr.bf16.mxu0 %v4295_v54 }
 0x702   : > { %v1867_v27 = vpop.f32.mrb[48].mxu1 }
 0x703   : > { %v2413_v55 = vpack.c.bf16 %v1867_v27, %v1867_v27  ;;  %v3899_v40 = vpop.f32.mrb[49].mxu1 }
 0x704   : > { %v1870_v42 = vpop.f32.mrb[50].mxu1 }
 0x705   : > { %v3900_v51 = vpop.f32.mrb[51].mxu1  ;;  %3994 = vmatmul.mubr.msk.bf16.vlgmr.msra.gmra.mrb[80].mxu1 %vm657_vm5, %v2413_v55 }
 0x706   : > { %4004 = vmatpush3.bf16.msra.mxu1 %v4953_v44  ;;  %4005 = vmatprep.mubr.msk.bf16.mxu1 %vm4296_vm4, %v4295_v54  ;;  %v2011_v49 = vpop.f32.mrb[40].mxu0 }
 0x707   : > { %4015 = vmatprep.subr.bf16.mxu1 %v4295_v54  ;;  %v2416_v56 = vpack.c.bf16 %v2011_v49, %v2011_v49  ;;  %v3917_v34 = vpop.f32.mrb[41].mxu0 }
 0x708   : > { %v2014_v58 = vpop.f32.mrb[42].mxu0 }
 0x709   : > { %v3918_v57 = vpop.f32.mrb[43].mxu0  ;;  %4012 = vmatmul.mubr.msk.bf16.vlgmr.msra.gmra.mrb[72].mxu0 %vm657_vm5, %v2416_v56 }
 0x70a   : > { %v1963_v21 = vpop.f32.mrb[52].mxu1  ;;  %4022 = vmatpush3.bf16.msra.mxu0 %v4889_v41  ;;  %4023 = vmatprep.mubr.msk.bf16.mxu0 %vm4296_vm4, %v4295_v54 }
 0x70b   : > { %v2415_v59 = vpack.c.bf16 %v1963_v21, %v1963_v21  ;;  %v3911_v20 = vpop.f32.mrb[53].mxu1  ;;  %4033 = vmatprep.subr.bf16.mxu0 %v4295_v54 }
 0x70c   : > { %v1966_v48 = vpop.f32.mrb[54].mxu1 }
 0x70d   : > { %v3912_v60 = vpop.f32.mrb[55].mxu1  ;;  %4006 = vmatmul.mubr.msk.bf16.vlgmr.msra.gmra.mrb[84].mxu1 %vm657_vm5, %v2415_v59 }
 0x70e   : > { %v2107_v62 = vpop.f32.mrb[44].mxu0  ;;  %4016 = vmatpush3.bf16.msra.mxu1 %v4899_v2  ;;  %4017 = vmatprep.mubr.msk.bf16.mxu1 %vm4296_vm4, %v4295_v54 }
 0x70f   : > { %v2802_v63 = vpack.c.bf16 %v2107_v62, %v2107_v62  ;;  %v3929_v16 = vpop.f32.mrb[45].mxu0  ;;  %4027 = vmatprep.subr.bf16.mxu1 %v4295_v54 }
 0x710   : > { %v2110_v4 = vpop.f32.mrb[46].mxu0 }
 0x711   : > { %v3930_v25 = vpop.f32.mrb[47].mxu0  ;;  %4024 = vmatmul.mubr.msk.bf16.vlgmr.msra.gmra.mrb[76].mxu0 %vm657_vm5, %v2802_v63 }
 0x712   : > { %v2059_v41 = vpop.f32.mrb[56].mxu1  ;;  %4034 = vmatpush3.bf16.msra.mxu0 %v4917_v10  ;;  %4035 = vmatprep.mubr.msk.bf16.mxu0 %vm4296_vm4, %v4295_v54 }
 0x713   : > { %v2801_v52 = vpack.c.bf16 %v2059_v41, %v2059_v41  ;;  %v3923_v45 = vpop.f32.mrb[57].mxu1  ;;  %4045 = vmatprep.subr.bf16.mxu0 %v4295_v54 }
 0x714   : > { %v2062_v36 = vpop.f32.mrb[58].mxu1 }
 0x715   : > { %v3924_v46 = vpop.f32.mrb[59].mxu1  ;;  %4018 = vmatmul.mubr.msk.bf16.vlgmr.msra.gmra.mrb[88].mxu1 %vm657_vm5, %v2801_v52 }
 0x716   : > { %v2203_v43 = vpop.f32.mrb[48].mxu0  ;;  %4028 = vmatpush3.bf16.msra.mxu1 %v4908_v37  ;;  %4029 = vmatprep.mubr.msk.bf16.mxu1 %vm4296_vm4, %v4295_v54 }
 0x717   : > { %v2804_v3 = vpack.c.bf16 %v2203_v43, %v2203_v43  ;;  %v3941_v8 = vpop.f32.mrb[49].mxu0  ;;  %4039 = vmatprep.subr.bf16.mxu1 %v4295_v54 }
 0x718   : > { %v2206_v1 = vpop.f32.mrb[50].mxu0 }
 0x719   : > { %v3942_v2 = vpop.f32.mrb[51].mxu0  ;;  %4036 = vmatmul.mubr.msk.bf16.vlgmr.msra.gmra.mrb[80].mxu0 %vm657_vm5, %v2804_v3 }
 0x71a   : > { %v2155_v5 = vpop.f32.mrb[60].mxu1  ;;  %4046 = vmatpush3.bf16.msra.mxu0 %v4927_v29  ;;  %4047 = vmatprep.mubr.msk.bf16.mxu0 %vm4296_vm4, %v4295_v54 }
 0x71b   : > { %v2803_v28 = vpack.c.bf16 %v2155_v5, %v2155_v5  ;;  %v3935_v12 = vpop.f32.mrb[61].mxu1  ;;  %4057 = vmatprep.subr.bf16.mxu0 %v4295_v54 }
 0x71c   : > { %v2158_v37 = vpop.f32.mrb[62].mxu1 }
 0x71d   : > { %v3936_v17 = vpop.f32.mrb[63].mxu1  ;;  %4030 = vmatmul.mubr.msk.bf16.vlgmr.msra.gmra.mrb[92].mxu1 %vm657_vm5, %v2803_v28 }
 0x71e   : > { %v2299_v7 = vpop.f32.mrb[52].mxu0  ;;  %4040 = vmatpush3.bf16.msra.mxu1 %v4930_v61  ;;  %4041 = vmatprep.mubr.msk.bf16.mxu1 %vm4296_vm4, %v4295_v54 }
 0x71f   : > { %v2806_v22 = vpack.c.bf16 %v2299_v7, %v2299_v7  ;;  %v3953_v10 = vpop.f32.mrb[53].mxu0  ;;  %4051 = vmatprep.subr.bf16.mxu1 %v4295_v54 }
 0x720   : > { %v2302_v11 = vpop.f32.mrb[54].mxu0 }
 0x721   : > { %v3954_v13 = vpop.f32.mrb[55].mxu0  ;;  %4048 = vmatmul.mubr.msk.bf16.vlgmr.msra.gmra.mrb[84].mxu0 %vm657_vm5, %v2806_v22 }
 0x722   : > { %v2251_v15 = vpop.f32.mrb[64].mxu1  ;;  %4058 = vmatpush3.bf16.msra.mxu0 %v4944_v30  ;;  %4059 = vmatprep.mubr.msk.bf16.mxu0 %vm4296_vm4, %v4295_v54 }
 0x723   : > { %v2805_v0 = vpack.c.bf16 %v2251_v15, %v2251_v15  ;;  %v3947_v18 = vpop.f32.mrb[65].mxu1  ;;  %4071 = vmatprep.subr.bf16.mxu0 %v4295_v54 }
 0x724   : > { %v2254_v19 = vpop.f32.mrb[66].mxu1  ;;  %v4239_v18 = vld [vmem:[#allocation2] sm:$0xff] }
 0x725   : > { %v3948_v23 = vpop.f32.mrb[67].mxu1  ;;  %4042 = vmatmul.mubr.msk.bf16.vlgmr.msra.gmra.mrb[96].mxu1 %vm657_vm5, %v2805_v0  ;;  %v3631_v0 = vld [vmem:[%s4394_s21 + $0x2] ss:$0 sm:$0xff] }
 0x726   : > { %4052 = vmatpush3.bf16.msra.mxu1 %v4953_v44  ;;  %4053 = vmatprep.mubr.msk.bf16.mxu1 %vm4296_vm4, %v4295_v54 }
 0x727   : > { %4063 = vmatprep.subr.bf16.mxu1 %v4295_v54 }
 0x744   : > { %v2395_v26 = vpop.f32.mrb[56].mxu0 }
 0x745   : > { %v2808_v53 = vpack.c.bf16 %v2395_v26, %v2395_v26  ;;  %v3965_v6 = vpop.f32.mrb[57].mxu0 }
 0x746   : > { %v2398_v29 = vpop.f32.mrb[58].mxu0 }
 0x747   : > { %v3966_v33 = vpop.f32.mrb[59].mxu0  ;;  %4060 = vmatmul.mubr.msk.bf16.vlgmr.msra.gmra.mrb[88].mxu0 %vm657_vm5, %v2808_v53 }
 0x748   : > { %4087 = vmatprep.mubr.msk.bf16.mxu0 %vm4296_vm4, %v4295_v54 }
 0x74b   : > { %v2347_v38 = vpop.f32.mrb[68].mxu1 }
 0x74c   : > { %v2807_v61 = vpack.c.bf16 %v2347_v38, %v2347_v38  ;;  %v3959_v14 = vpop.f32.mrb[69].mxu1 }
 0x74d   : > { %v2350_v47 = vpop.f32.mrb[70].mxu1 }
 0x74e   : > { %v3960_v24 = vpop.f32.mrb[71].mxu1  ;;  %4054 = vmatmul.mubr.msk.bf16.vlgmr.msra.gmra.mrb[100].mxu1 %vm657_vm5, %v2807_v61 }
 0x74f   : > { %4067 = vmatprep.mubr.msk.bf16.mxu1 %vm4296_vm4, %v4295_v54 }
 0x753   : > { %v2458_v50 = vpop.f32.mrb[72].mxu1 }
 0x754   : > { %v3971_v32 = vpop.f32.mrb[73].mxu1  ;;  %v2786_v9 = vsel %vm493_vm3, %v2458_v50, 0.0 }
 0x755   : > { %v2461_v31 = vpop.f32.mrb[74].mxu1 }
 0x756   : > { %v3972_v30 = vpop.f32.mrb[75].mxu1 }
 0x78f   : > { %v2504_v35 = vpop.f32.mrb[60].mxu0 }
 0x790   : > { %v2787_v39 = vsel %vm493_vm3, %v2504_v35, 0.0  ;;  %v3977_v27 = vpop.f32.mrb[61].mxu0 }
 0x791   : > { %v2788_v55 = vadd.f32 %v2787_v39, %v2786_v9  ;;  %v2507_v40 = vpop.f32.mrb[62].mxu0 }
 0x792   : > { %v3978_v44 = vpop.f32.mrb[63].mxu0 }
 0x797   : > { %v2550_v42 = vpop.f32.mrb[76].mxu1  ;;  %v2596_v51 = vpop.f32.mrb[64].mxu0 }
 0x798   : > { %v2789_v49 = vsel %vm493_vm3, %v2550_v42, 0.0  ;;  %v3983_v56 = vpop.f32.mrb[77].mxu1  ;;  %v3989_v34 = vpop.f32.mrb[65].mxu0  ;;  %v2791_v59 = vsel %vm493_vm3, %v2596_v51, 0.0 }
 0x799   : > { %v2790_v58 = vadd.f32 %v2789_v49, %v2788_v55  ;;  %v2553_v57 = vpop.f32.mrb[78].mxu1  ;;  %v2599_v21 = vpop.f32.mrb[66].mxu0 }
 0x79a   : > { %v3984_v20 = vpop.f32.mrb[79].mxu1  ;;  %v3990_v48 = vpop.f32.mrb[67].mxu0 }
 0x79b   : > { %v2792_v60 = vadd.f32 %v2791_v59, %v2790_v58 }
 0x79f   : > { %v2688_v62 = vpop.f32.mrb[68].mxu0 }
 0x7a0   : > { %v4001_v63 = vpop.f32.mrb[69].mxu0  ;;  %v2795_v46 = vsel %vm493_vm3, %v2688_v62, 0.0 }
 0x7a1   : > { %v2691_v16 = vpop.f32.mrb[70].mxu0 }
 0x7a2   : > { %v4002_v4 = vpop.f32.mrb[71].mxu0 }
 0x7d8   : > { %v2642_v25 = vpop.f32.mrb[80].mxu1 }
 0x7d9   : > { %v2793_v41 = vsel %vm493_vm3, %v2642_v25, 0.0  ;;  %v3995_v52 = vpop.f32.mrb[81].mxu1 }
 0x7da   : > { %v2794_v45 = vadd.f32 %v2793_v41, %v2792_v60  ;;  %v2645_v36 = vpop.f32.mrb[82].mxu1 }
 0x7db   : > { %v3996_v43 = vpop.f32.mrb[83].mxu1 }
 0x7dc   : > { %v2796_v3 = vadd.f32 %v2795_v46, %v2794_v45  ;;  %v2780_v8 = vpop.f32.mrb[72].mxu0 }
 0x7dd   : > { %v4013_v1 = vpop.f32.mrb[73].mxu0  ;;  %v2799_v22 = vsel %vm493_vm3, %v2780_v8, 0.0 }
 0x7de   : > { %v2783_v2 = vpop.f32.mrb[74].mxu0  ;;  %v4240_v1 = vld [vmem:[#allocation2 + $0x8] sm:$0xff] }
 0x7df   : > { %v4014_v5 = vpop.f32.mrb[75].mxu0 }
 0x7e0   : > { %v2734_v28 = vpop.f32.mrb[84].mxu1 }
 0x7e1   : > { %v2797_v12 = vsel %vm493_vm3, %v2734_v28, 0.0  ;;  %v4007_v37 = vpop.f32.mrb[85].mxu1 }
 0x7e2   : > { %v2798_v17 = vadd.f32 %v2797_v12, %v2796_v3  ;;  %v2737_v7 = vpop.f32.mrb[86].mxu1 }
 0x7e3   : > { %v4008_v10 = vpop.f32.mrb[87].mxu1 }
 0x7e4   : > { %v2800_v11 = vadd.f32 %v2799_v22, %v2798_v17  ;;  %v2889_v13 = vpop.f32.mrb[76].mxu0 }
 0x7e5   : > { %v4025_v15 = vpop.f32.mrb[77].mxu0  ;;  %v3154_v29 = vsel %vm493_vm3, %v2889_v13, 0.0 }
 0x7e6   : > { %v3168_v19 = vadd.f32 %v4239_v18, %v2800_v11  ;;  %v2892_v23 = vpop.f32.mrb[78].mxu0  ;;  %v4153_v18 = vld [vmem:[%s4399_s24] sm:$0xff]  }
 0x7e7   : > { %v4026_v26 = vpop.f32.mrb[79].mxu0  ;;  %4064 = vmatpush3.bf16.msra.mxu1 %v4153_v18  ;;  %v3420_v18 = vld [vmem:[#allocation3] sm:$0xff] (!%p3647_p6) }
 0x7e8   : > { %v2846_v53 = vpop.f32.mrb[88].mxu1  ;;  %v5015_v6 = vadd.f32 %v3631_v0, %v3168_v19  ;;  %v4154_v19 = vld [vmem:[%s4399_s24 + $0x8] sm:$0xff]   ;;  %4065 = vmatprep.subr.bf16.mxu1 %v4295_v54 }
 0x7e9   : > { %v3153_v33 = vsel %vm493_vm3, %v2846_v53, 0.0  ;;  %v4019_v38 = vpop.f32.mrb[89].mxu1 }
 0x7ea   : > { %v3155_v61 = vadd.f32 %v3154_v29, %v3153_v33  ;;  %v2849_v14 = vpop.f32.mrb[90].mxu1  ;;  %v3176_v47 = vsel %vm493_vm3, %v5015_v6, 0.0 }
 0x7eb   : > { %3177 = vadd.xlane.f32.xlu0 %v3176_v47  ;;  %v4020_v24 = vpop.f32.mrb[91].mxu1  ;;  %4066 = vmatpush3.bf16.msra.mxu1 %v4154_v19  ;;  %v3632_v47 = vld [vmem:[%s4394_s21 + $0x3] ss:$0 sm:$0xff]  ;;  %v3421_v19 = vld [vmem:[#allocation3 + $0x8] sm:$0xff] (!%p3647_p6) }
 0x7ec   : > { %v2975_v50 = vpop.f32.mrb[80].mxu0 }
 0x7ed   : > { %v4037_v32 = vpop.f32.mrb[81].mxu0  ;;  %v3158_v40 = vsel %vm493_vm3, %v2975_v50, 0.0 }
 0x7ee   : > { %v2978_v31 = vpop.f32.mrb[82].mxu0 }
 0x7ef   : > { %v4038_v30 = vpop.f32.mrb[83].mxu0  ;;  %v3633_v31 = vld [vmem:[%s4394_s21 + $0x4] ss:$0 sm:$0xff] }
 0x7f0   : > { %v2932_v35 = vpop.f32.mrb[92].mxu1 }
 0x7f1   : > { %v3156_v9 = vsel %vm493_vm3, %v2932_v35, 0.0  ;;  %v4031_v39 = vpop.f32.mrb[93].mxu1 }
 0x7f2   : > { %v3157_v27 = vadd.f32 %v3156_v9, %v3155_v61  ;;  %v2935_v55 = vpop.f32.mrb[94].mxu1 }
 0x7f3   : > { %v4032_v44 = vpop.f32.mrb[95].mxu1  ;;  %v4156_v55 = vld [vmem:[%s4409_s16 + $0x8] sm:$0xff]  }
 0x7f4   : > { %v3061_v42 = vpop.f32.mrb[84].mxu0  ;;  %v3159_v51 = vadd.f32 %v3158_v40, %v3157_v27  ;;  %v4155_v27 = vld [vmem:[%s4409_s16] sm:$0xff]   ;;  %v4157_v40 = vld [vmem:[%s4409_s16 + $0x10] sm:$0xff]   ;;  %v4158_v44 = vld [vmem:[%s4409_s16 + $0x18] sm:$0xff]  }
 0x7f5   : > { %v4049_v49 = vpop.f32.mrb[85].mxu0  ;;  %v3162_v48 = vsel %vm493_vm3, %v3061_v42, 0.0  ;;  %4072 = vmatpush3.bf16.msra.mxu0 %v4155_v27  ;;  %v4159_v42 = vld [vmem:[%s4409_s16 + $0x20] sm:$0xff]  }
 0x7f6   : > { %v3064_v56 = vpop.f32.mrb[86].mxu0  ;;  %4073 = vmatprep.subr.bf16.mxu0 %v4295_v54  ;;  %v4161_v49 = vld [vmem:[%s4409_s16 + $0x30] sm:$0xff]  }
 0x7f7   : > { %v4050_v34 = vpop.f32.mrb[87].mxu0  ;;  %v4162_v56 = vld [vmem:[%s4409_s16 + $0x38] sm:$0xff]  }
 0x7f8   : > { %v3018_v58 = vpop.f32.mrb[96].mxu1  ;;  %v3634_v34 = vld [vmem:[%s416_s13] ss:$0 sm:$0xff] }
 0x7f9   : > { %v3160_v57 = vsel %vm493_vm3, %v3018_v58, 0.0  ;;  %v4043_v21 = vpop.f32.mrb[97].mxu1  ;;  %4074 = vmatpush3.bf16.msra.mxu0 %v4156_v55 }
 0x7fa   : > { %v3161_v59 = vadd.f32 %v3160_v57, %v3159_v51  ;;  %v3021_v20 = vpop.f32.mrb[98].mxu1  ;;  %4075 = vmatprep.subr.bf16.mxu0 %v4295_v54  ;;  %v4160_v51 = vld [vmem:[%s4409_s16 + $0x28] sm:$0xff]  }
 0x7fb   : > { %v4044_v60 = vpop.f32.mrb[99].mxu1 }
 0x7fc   : > { %v3163_v62 = vadd.f32 %v3162_v48, %v3161_v59 }
 0x7fd   : > { %4076 = vmatpush3.bf16.msra.mxu0 %v4157_v40 }
 0x7fe   : > { %4077 = vmatprep.subr.bf16.mxu0 %v4295_v54 }
 0x801   : > { %4078 = vmatpush3.bf16.msra.mxu0 %v4158_v44 }
 0x802   : > { %4079 = vmatprep.subr.bf16.mxu0 %v4295_v54 }
 0x805   : > { %4080 = vmatpush3.bf16.msra.mxu0 %v4159_v42 }
 0x806   : > { %4081 = vmatprep.subr.bf16.mxu0 %v4295_v54 }
 0x809   : > { %4082 = vmatpush3.bf16.msra.mxu0 %v4160_v51 }
 0x80a   : > { %4083 = vmatprep.subr.bf16.mxu0 %v4295_v54 }
 0x80d   : > { %4084 = vmatpush3.bf16.msra.mxu0 %v4161_v49 }
 0x80e   : > { %4085 = vmatprep.subr.bf16.mxu0 %v4295_v54 }
 0x811   : > { %4086 = vmatpush3.bf16.msra.mxu0 %v4162_v56 }
 0x81a   : > { %v3147_v63 = vpop.f32.mrb[88].mxu0 }
 0x81b   : > { %v4061_v16 = vpop.f32.mrb[89].mxu0  ;;  %v3166_v43 = vsel %vm493_vm3, %v3147_v63, 0.0 }
 0x81c   : > { %v3150_v4 = vpop.f32.mrb[90].mxu0 }
 0x81d   : > { %v4062_v25 = vpop.f32.mrb[91].mxu0 }
 0x821   : > { %v3104_v41 = vpop.f32.mrb[100].mxu1 }
 0x822   : > { %v3164_v52 = vsel %vm493_vm3, %v3104_v41, 0.0  ;;  %v4055_v45 = vpop.f32.mrb[101].mxu1 }
 0x823   : > { %v3165_v36 = vadd.f32 %v3164_v52, %v3163_v62  ;;  %v3107_v46 = vpop.f32.mrb[102].mxu1 }
 0x824   : > { %v4056_v3 = vpop.f32.mrb[103].mxu1 }
 0x825   : > { %v3167_v8 = vadd.f32 %v3166_v43, %v3165_v36 }
 0x827   : > { %v3169_v2 = vadd.f32 %v4240_v1, %v3167_v8 }
 0x829   : > { %v5027_v5 = vadd.f32 %v3631_v0, %v3169_v2 }
 0x82b   : > { %v3179_v28 = vsel %vm493_vm3, %v5027_v5, 0.0 }
 0x82c   : > { %3180 = vadd.xlane.f32.xlu1 %v3179_v28 }
 0x878   : > { %v3178_v12 = vpop.xlane.xlu0 %3177 }
 0x879   : > { %v3182_v37 = vmul.f32 0.03125, %v3178_v12 }
 0x87b   : > { %v3184_v17 = vsub.f32 %v5015_v6, %v3182_v37  ;;  %v3646_v37 = vld [vmem:[%s4394_s21 + $0x5] ss:$0 sm:$0xff] }
 0x87d   : > { %v3186_v7 = vmul.f32 %v3184_v17, %v3184_v17 }
 0x87f   : > { %v3188_v22 = vsel %vm493_vm3, %v3186_v7, 0.0 }
 0x880   : > { %3189 = vadd.xlane.f32.xlu0 %v3188_v22 }
 0x8b9   : > { %v3181_v10 = vpop.xlane.xlu1 %3180 }
 0x8ba   : > { %v3183_v11 = vmul.f32 0.03125, %v3181_v10 }
 0x8bc   : > { %v3185_v13 = vsub.f32 %v5027_v5, %v3183_v11 }
 0x8be   : > { %v3187_v15 = vmul.f32 %v3185_v13, %v3185_v13 }
 0x8c0   : > { %v3191_v0 = vsel %vm493_vm3, %v3187_v15, 0.0 }
 0x8c1   : > { %3192 = vadd.xlane.f32.xlu0 %v3191_v0 }
 0x90d   : > { %v3190_v23 = vpop.xlane.xlu0 %3189 }
 0x90e   : > { %v3194_v26 = vmul.f32 0.03125, %v3190_v23 }
 0x910   : > { %v3196_v53 = vadd.f32 1e-05, %v3194_v26 }
 0x912   : > { %4231 = vrsqrt.f32 %v3196_v53 }
 0x91c   : > { %v4232_v61 = vpop.eup %4231 }
 0x91d   : > { %v3200_v14 = vmul.f32 %v4232_v61, %v3184_v17 }
 0x91f   : > { %v3206_v50 = vmul.f32 %v3632_v47, %v3200_v14 }
 0x921   : > { %v3212_v35 = vadd.f32 %v3633_v31, %v3206_v50 }
 0x94e   : > { %v3193_v29 = vpop.xlane.xlu0 %3192 }
 0x94f   : > { %v3195_v33 = vmul.f32 0.03125, %v3193_v29 }
 0x951   : > { %v3197_v38 = vadd.f32 1e-05, %v3195_v33 }
 0x953   : > { %4233 = vrsqrt.f32 %v3197_v38 }
 0x95d   : > { %v4234_v24 = vpop.eup %4233 }
 0x95e   : > { %v3201_v32 = vmul.f32 %v4234_v24, %v3185_v13 }
 0x960   : > { %v3207_v30 = vmul.f32 %v3632_v47, %v3201_v32 }
 0x962   : > { %v3213_v9 = vadd.f32 %v3633_v31, %v3207_v30 }
 0x964   : > { %v3214_v39 = vpack.c.bf16 %v3213_v9, %v3212_v35 }
 0x966   : > { %4068 = vmatmul.mubr.msk.bf16.vlgmr.msra.gmra.mrb[104].mxu1 %vm493_vm3, %v3214_v39 }
 0xa39   : > { %v3275_v58 = vpop.f32.mrb[104].mxu1 }
 0xa3a   : > { %v3276_v57 = vadd.f32 %v3634_v34, %v3275_v58  ;;  %v4069_v21 = vpop.f32.mrb[105].mxu1 }
 0xa3b   : > { %v3278_v59 = vpop.f32.mrb[106].mxu1 }
 0xa3c   : > { %v3284_v20 = vmul.f32 %v3276_v57, %v3276_v57  ;;  %v3279_v48 = vadd.f32 %v3634_v34, %v3278_v59  ;;  %v4070_v60 = vpop.f32.mrb[107].mxu1  ;;  %v3282_v3 = vmul.f32 0.5, %v3276_v57 }
 0xa3e   : > { %v3286_v62 = vmul.f32 %v3284_v20, %v3276_v57  ;;  %v3285_v63 = vmul.f32 %v3279_v48, %v3279_v48  ;;  %v3283_v8 = vmul.f32 0.5, %v3279_v48 }
 0xa40   : > { %v3288_v16 = vmul.f32 0.044715, %v3286_v62  ;;  %v3287_v4 = vmul.f32 %v3285_v63, %v3279_v48 }
 0xa42   : > { %v3290_v25 = vadd.f32 %v3288_v16, %v3276_v57  ;;  %v3289_v41 = vmul.f32 0.044715, %v3287_v4 }
 0xa44   : > { %v3292_v54 = vmul.f32 0.7978845, %v3290_v25  ;;  %v3291_v52 = vadd.f32 %v3289_v41, %v3279_v48 }
 0xa46   : > { %4235 = vtanh.f32 %v3292_v54  ;;  %v3293_v45 = vmul.f32 0.7978845, %v3291_v52 }
 0xa48   : > { %4237 = vtanh.f32 %v3293_v45 }
 0xa50   : > { %v4236_v36 = vpop.eup %4235 }
 0xa51   : > { %v3296_v46 = vadd.f32 1.0, %v4236_v36 }
 0xa52   : > { %v4238_v43 = vpop.eup %4237 }
 0xa53   : > { %v3297_v1 = vadd.f32 1.0, %v4238_v43  ;;  %v3298_v2 = vmul.f32 %v3296_v46, %v3282_v3 }
 0xa55   : > { %v3299_v28 = vmul.f32 %v3297_v1, %v3283_v8 }
 0xa57   : > { %v3300_v12 = vpack.c.bf16 %v3299_v28, %v3298_v2 }
 0xa59   : > { %4088 = vmatmul.mubr.bf16.vlgmr.msra.gmra.mrb[92].mxu0 %v3300_v12 }
 0xb2c   : > { %v3399_v17 = vpop.f32.mrb[92].mxu0 }
 0xb2d   : > { %v3406_v7 = vadd.f32 %v3399_v17, %v5015_v6  ;;  %v4089_v22 = vpop.f32.mrb[93].mxu0  ;;  %3419 = sbr.rel (%p3647_p6) target bundleno = 2870 (0xb36), region = 60 }
 0xb2e   : > { %v3402_v10 = vpop.f32.mrb[94].mxu0 }
 0xb2f   : > { %v3412_v11 = vadd.f32 %v3646_v37, %v3406_v7  ;;  %v3407_v13 = vadd.f32 %v3402_v10, %v5027_v5  ;;  %v4090_v15 = vpop.f32.mrb[95].mxu0 }
 0xb31   : > { %3414 = vst.msk [vmem:[#allocation2] sm:$0xff] %vm493_vm3, %v3412_v11  ;;  %v3413_v0 = vadd.f32 %v3646_v37, %v3407_v13  ;;  %v3422_v23 = vadd.f32 (!%p3647_p6), %v3420_v18, %v3412_v11 }
 0xb33   : > { %3415 = vst.msk [vmem:[#allocation2 + $0x8] sm:$0xff] %vm493_vm3, %v3413_v0  ;;  %v3423_v26 = vadd.f32 (!%p3647_p6), %v3421_v19, %v3413_v0  ;;  %3424 = vst.msk [vmem:[#allocation4] sm:$0xff] (!%p3647_p6), %vm493_vm3, %v3422_v23 }
 0xb35   : > { %3426 = vst.msk [vmem:[#allocation4 + $0x8] sm:$0xff] %vm493_vm3, %v3423_v26 }
 0xb36 PF: > { %s5117_s10 = sadd.s32 4294967295, %s4293_s29   ;;  %s4306_s13 = smov [#allocation4]  }
 0xb37   : > { %p5071_p7 = scmp.eq.s32.totalorder %s5117_s10, 2  ;;  %s3436_s16 = sshll.u32 %s4306_s13, 4  ;;  %s3437_s16 = int_to_ptr.vmem [resolvable:$true] %s3436_s16 }
 0xb38   : > { %s4241_s27 = scalar_lea.vmem %s3437_s16, 256  ;;  %p4248_p11 = scmp.lt.s32.totalorder %s3437_s16, %s3437_s16 }
 0xb39   : > { %p4242_p8 = scmp.ne.s32.totalorder %s3437_s16, %s4241_s27  ;;  %p4249_p12 = scmp.lt.s32.totalorder %s4241_s27, %s4241_s27 }
 0xb3b   : > { %p4243_p9 = pnand %p4242_p8, %p5071_p7  ;;  %p4250_p13 = por %p4249_p12, %p4248_p11 }
 0xb3d   : > { %p4244_p10 = pneg %p4243_p9 }
 0xb3f   : > { %p4251_p0 = pnand %p4250_p13, %p4244_p10 }
 0xb41   : > { %4254 = shalt.err (!%p4251_p0)
}
 0xb42   : > { %s4255_s20 = scalar_lea.hbm %s5114_s8, 256 }
 0xb43   : > { %p4256_p1 = scmp.ne.s32.totalorder %s5114_s8, %s4255_s20  ;;  %p4261_p4 = scmp.lt.u32.totalorder %s4255_s20, %s5114_s8 }
 0xb45   : > { %p4257_p2 = pnand %p4256_p1, %p5071_p7 }
 0xb47   : > { %p4258_p3 = pneg %p4257_p2 }
 0xb49   : > { %p4263_p5 = pnand %p4261_p4, %p4258_p3 }
 0xb4b   : > { %4266 = shalt.err (!%p4263_p5)
}
 0xb4c   : > { %s4307_s23 = smov 128   ;;  %s4308_s25 = smov 8  }
 0xb4d   : > { %4092 = dma.vmem_to_hbm [thread:$0]  (%p5071_p7), %s3437_s16, 256, %s5114_s8, [#allocation5], %s4307_s23, %s4307_s23, %s4308_s25  }
 0xb4e   : > { %4280 = dma.done.wait (%p5071_p7), [#allocation5], 256  }
 0xb4f   : > { %4282 = vsyncadd (%p5071_p7), [#allocation5], 4294967040 }
 0xb50 PF: > { %s19_s29 = sadd.s32 1, %s4293_s29   ;;  %s5119_s27 = smov %s4289_s28 }
 0xb51   : > { %p16_p6 = scmp.ge.s32.totalorder %s19_s29, 5   ;;  %s5120_s28 = smov %s5122_s9 }
 0xb53   :  { %18 = sbr.rel (!%p16_p6) target bundleno = 4 (0x4), region = 108 }
 0xb5a   :  { %3452 = vsyncpa [#allocation5], 1 }
 0xb5b   :  { %3454 = vsyncpa [#allocation5 + $0x1], 1 }

</bundles_post_ra>
